<compile_context>
chip_gen: v7x
topology: tpu7x:2x2x1
jax: 0.10.0
libtpu: 0.0.40
codegen_flags: <defaults>
</compile_context>

<pallas_src>
import jax
import jax.numpy as jnp
from jax import lax
from jax.experimental import pallas as pl
from jax.experimental.pallas import tpu as pltpu


def _round_up(x, m):
    return ((x + m - 1) // m) * m


def _is_v5e():
    # v5e's MXU is 128-deep, so the K*Ci-deep im2col contraction buys nothing there and the
    # lane concat only adds a VMEM temp + vst traffic (v5e has a single vst slot).
    try:
        kind = jax.devices()[0].device_kind.lower()
        return ("v5 lite" in kind) or ("v5e" in kind) or ("v5litepod" in kind)
    except Exception:
        return False


# ---------------------------------------------------------------------------
# Fused multi-TemporalBlock (+ optional final Linear) kernel
# ---------------------------------------------------------------------------

def _make_group_kernel(*, K, blocks_meta, fuse_linear, t_tile, im2col):
    """One fused kernel for a list of TemporalBlocks, optionally ending with the final Linear.

    Ref order:
      x_ref                                  (t_tile, C0_pad)        bf16 input tile
      per block:  (w_j, b_j) x n_convs       (K*Ci_pad, Co_pad) bf16 / (1, Co_pad) f32
                  [wd, bd] if downsample     (Ci_pad, Co_pad)  bf16 / (1, Co_pad) f32
      [wl, bl] if fuse_linear                (C_pad, Cl_pad)   bf16 / (1, Cl_pad) f32
      o_ref                                  (t_tile, Cout_pad)      bf16 (intermediate) / f32 (final)
      halo scratch, one per conv per block   (t_tile, Ci_pad)        bf16 (previous tile's conv input)
    """

    def kernel(*refs):
        idx = 0
        x_ref = refs[idx]; idx += 1
        blk_refs = []
        for bm in blocks_meta:
            convs = []
            for _ in range(bm["n_convs"]):
                convs.append((refs[idx], refs[idx + 1])); idx += 2
            ds = None
            if bm["has_ds"]:
                ds = (refs[idx], refs[idx + 1]); idx += 2
            blk_refs.append((convs, ds))
        lin = None
        if fuse_linear:
            lin = (refs[idx], refs[idx + 1]); idx += 2
        o_ref = refs[idx]; idx += 1
        halo_refs = refs[idx:]

        t = pl.program_id(1)

        # Zero all causal halos at the start of each batch element's time sweep.
        @pl.when(t == 0)
        def _():
            for hr in halo_refs:
                hr[...] = jnp.zeros(hr.shape, hr.dtype)

        # Hoisted iota: one (t_tile, 1) index vector reused by every halo blend.
        row = lax.broadcasted_iota(jnp.int32, (t_tile, 1), 0)

        h_bf = x_ref[...]                        # (t_tile, Cpad) bf16 current activations
        halo_i = 0
        for bm, (convs, ds) in zip(blocks_meta, blk_refs):
            d = bm["d"]
            x_in_bf = h_bf                       # residual source for this block
            cur_f32 = None
            for j in range(bm["n_convs"]):
                w_ref, b_ref = convs[j]
                prev_ref = halo_refs[halo_i]; halo_i += 1

                cur_bf = h_bf
                prev_bf = prev_ref[...]          # previous time tile's input to this conv
                prev_ref[...] = cur_bf           # halo source for the next time tile
                # TODO(synk): shrink halo scratch to only the last round_up((K-1)*d, 16) rows
                # (VMEM relief at t_tile>=512 / wide channels, esp. v7x's 64 MiB).

                # Build the K causal taps in VMEM.
                #   tap_k[i] = cur[i - s] for i >= s, prev[t_tile - s + i] for i < s
                # via a single blend + single sublane roll:
                #   mix = (rows >= t_tile - s) ? prev : cur;  tap = roll(mix, s, axis=0)
                taps = []
                for k in range(K):
                    s = (K - 1 - k) * d
                    if s == 0:
                        taps.append(cur_bf)
                    else:
                        mix = jnp.where(row >= t_tile - s, prev_bf, cur_bf)   # bf16 select
                        tap = pltpu.roll(mix.astype(jnp.float32), s, axis=0)  # f32 sublane roll
                        taps.append(tap.astype(jnp.bfloat16))

                if im2col and K > 1:
                    # Lane-axis im2col -> one K*Ci-deep MXU matmul (ideal on v6e/v7x 256-wide MXU).
                    xcat = jnp.concatenate(taps, axis=-1)
                    acc = jnp.dot(xcat, w_ref[...], preferred_element_type=jnp.float32)
                else:
                    # Per-tap 128-deep matmuls accumulated in f32 (v5e path; no concat temp).
                    Ci = cur_bf.shape[-1]
                    acc = jnp.dot(taps[0], w_ref[0:Ci, :],
                                  preferred_element_type=jnp.float32)
                    for k in range(1, K):
                        acc = acc + jnp.dot(taps[k], w_ref[k * Ci:(k + 1) * Ci, :],
                                            preferred_element_type=jnp.float32)

                acc = acc + b_ref[...]
                cur_f32 = jnp.maximum(acc, 0.0)      # ReLU (dropout = identity at inference)
                h_bf = cur_f32.astype(jnp.bfloat16)

            # Residual (+ optional 1x1 downsample conv) and block-final ReLU (fused epilogue).
            if ds is not None:
                wd_ref, bd_ref = ds
                res = jnp.dot(x_in_bf, wd_ref[...],
                              preferred_element_type=jnp.float32) + bd_ref[...]
            else:
                res = x_in_bf.astype(jnp.float32)
            blk_f32 = jnp.maximum(cur_f32 + res, 0.0)
            h_bf = blk_f32.astype(jnp.bfloat16)

        if fuse_linear:
            # Final nn.Linear fused into the epilogue of the last group (no extra HBM round trip).
            wl_ref, bl_ref = lin
            y = jnp.dot(h_bf, wl_ref[...], preferred_element_type=jnp.float32) + bl_ref[...]
            o_ref[...] = y.astype(o_ref.dtype)
        else:
            o_ref[...] = h_bf.astype(o_ref.dtype)

    return kernel


def fused_tcn_group(h, group_blocks, linear, *, kernel_size, t_tile, im2col):
    """h: (B, Tp, Cin_pad) bf16.  Runs a group of TemporalBlocks (+ optional final Linear)
    as ONE pallas_call.  Returns (B, Tp, Cout_pad) bf16, or f32 if the Linear is fused."""
    B, Tp, Cip0 = h.shape
    assert Tp % t_tile == 0
    NT = Tp // t_tile

    inputs = [h]
    in_specs = [pl.BlockSpec((None, t_tile, Cip0), lambda b, t: (b, t, 0))]
    blocks_meta = []
    scratch = []
    flops = 0
    weight_bytes = 0

    for blk in group_blocks:
        convs = blk["convs"]
        d = convs[0][2]
        assert (kernel_size - 1) * d <= t_tile, "dilation halo exceeds time tile"
        for (wp, bp, _, Ci, Co) in convs:
            inputs += [wp, bp]
            # Constant index_map -> weights stay VMEM-resident across the grid.
            # TODO(synk): pipeline_mode=pl.Buffered(1) would single-buffer these on v7x.
            in_specs += [pl.BlockSpec(wp.shape, lambda b, t: (0, 0)),
                         pl.BlockSpec(bp.shape, lambda b, t: (0, 0))]
            scratch.append(pltpu.VMEM((t_tile, Ci), jnp.bfloat16))
            flops += 2 * B * Tp * kernel_size * Ci * Co
            weight_bytes += int(wp.size) * 2 + int(bp.size) * 4
        has_ds = blk["downsample"] is not None
        if has_ds:
            wdp, bdp = blk["downsample"]
            inputs += [wdp, bdp]
            in_specs += [pl.BlockSpec(wdp.shape, lambda b, t: (0, 0)),
                         pl.BlockSpec(bdp.shape, lambda b, t: (0, 0))]
            flops += 2 * B * Tp * wdp.shape[0] * wdp.shape[1]
            weight_bytes += int(wdp.size) * 2 + int(bdp.size) * 4
        blocks_meta.append({"n_convs": len(convs), "d": d, "has_ds": has_ds})

    fuse_linear = linear is not None
    if fuse_linear:
        wl, bl = linear
        inputs += [wl, bl]
        in_specs += [pl.BlockSpec(wl.shape, lambda b, t: (0, 0)),
                     pl.BlockSpec(bl.shape, lambda b, t: (0, 0))]
        flops += 2 * B * Tp * wl.shape[0] * wl.shape[1]
        weight_bytes += int(wl.size) * 2 + int(bl.size) * 4
        Cout = wl.shape[1]
        out_dtype = jnp.float32
    else:
        Cout = group_blocks[-1]["convs"][-1][4]
        out_dtype = jnp.bfloat16

    kern = _make_group_kernel(K=kernel_size, blocks_meta=blocks_meta,
                              fuse_linear=fuse_linear, t_tile=t_tile, im2col=im2col)

    out_elem = 4 if out_dtype == jnp.float32 else 2
    bytes_acc = B * Tp * Cip0 * 2 + B * Tp * Cout * out_elem + weight_bytes

    # Explicit VMEM limit from the actual footprint (+ headroom): 2-buffered in/out tiles,
    # (conservatively double-buffered) resident weights, and the halo scratch.
    tile_bytes = t_tile * Cip0 * 2 + t_tile * Cout * out_elem
    scratch_bytes = sum(t_tile * c[3] * 2 for blk in group_blocks for c in blk["convs"])
    vmem_need = 2 * tile_bytes + 2 * weight_bytes + scratch_bytes
    vmem_limit = int(min(max(2 * vmem_need + (8 << 20), 32 << 20), 64 << 20))

    return pl.pallas_call(
        kern,
        out_shape=jax.ShapeDtypeStruct((B, Tp, Cout), out_dtype),
        grid=(B, NT),
        in_specs=in_specs,
        out_specs=pl.BlockSpec((None, t_tile, Cout), lambda b, t: (b, t, 0)),
        scratch_shapes=scratch,
        # Time axis MUST be innermost and "arbitrary": the halo scratch carries causal
        # state across time tiles.  Batch axis shards across v7x's two TensorCores.
        # TODO(synk): for B == 1 (or odd B) on v7x, add a second parallel axis so both cores stay busy.
        compiler_params=pltpu.CompilerParams(
            dimension_semantics=("parallel", "arbitrary"),
            vmem_limit_bytes=vmem_limit),
        cost_estimate=pl.CostEstimate(flops=flops, transcendentals=0,
                                      bytes_accessed=bytes_acc),
    )(*inputs)


# ---------------------------------------------------------------------------
# Parameter construction (deterministic synthetic weights, nn.Module-shaped)
# ---------------------------------------------------------------------------

def init_tcn_params(key, *, input_size, output_size, num_channels, kernel_size,
                    num_of_convs):
    params = {"blocks": []}
    scale = 0.1
    for i, out_ch in enumerate(num_channels):
        in_ch = input_size if i == 0 else num_channels[i - 1]
        dilation = 2 ** i
        convs = []
        for j in range(num_of_convs):
            ci = in_ch if j == 0 else out_ch
            key, kw, kb = jax.random.split(key, 3)
            # PyTorch Conv1d weight is (Co, Ci, K); stored here as (K, Ci, Co).
            w = scale * jax.random.normal(kw, (kernel_size, ci, out_ch), jnp.float32)
            b = scale * jax.random.normal(kb, (1, out_ch), jnp.float32)
            convs.append((w, b, dilation))
        downsample = None
        if in_ch != out_ch:  # residual 1x1 conv (nn.Conv1d(in_ch, out_ch, 1))
            key, kw, kb = jax.random.split(key, 3)
            wd = scale * jax.random.normal(kw, (in_ch, out_ch), jnp.float32)
            bd = scale * jax.random.normal(kb, (1, out_ch), jnp.float32)
            downsample = (wd, bd)
        params["blocks"].append({"convs": convs, "downsample": downsample})
    # nn.Linear(num_channels[-1], output_size); PyTorch weight (Co, Ci) stored as (Ci, Co).
    key, kw, kb = jax.random.split(key, 3)
    wl = scale * jax.random.normal(kw, (num_channels[-1], output_size), jnp.float32)
    bl = scale * jax.random.normal(kb, (1, output_size), jnp.float32)
    params["last"] = (wl, bl)
    return params


def prepare_pallas_params(params, *, kernel_size):
    """Pad channels to multiples of 128, flatten conv taps to (K*Ci_pad, Co_pad), cast MXU operands to bf16."""
    K = kernel_size
    blocks_p = []
    for blk in params["blocks"]:
        convs_p = []
        for (w, b, d) in blk["convs"]:
            _, Ci, Co = w.shape
            Cip, Cop = _round_up(Ci, 128), _round_up(Co, 128)
            wp = jnp.zeros((K, Cip, Cop), jnp.float32).at[:, :Ci, :Co].set(w)
            wp = wp.reshape(K * Cip, Cop).astype(jnp.bfloat16)
            bp = jnp.zeros((1, Cop), jnp.float32).at[:, :Co].set(b)
            convs_p.append((wp, bp, d, Cip, Cop))
        if blk["downsample"] is not None:
            wd, bd = blk["downsample"]
            Ci, Co = wd.shape
            Cip, Cop = _round_up(Ci, 128), _round_up(Co, 128)
            wdp = jnp.zeros((Cip, Cop), jnp.float32).at[:Ci, :Co].set(wd).astype(jnp.bfloat16)
            bdp = jnp.zeros((1, Cop), jnp.float32).at[:, :Co].set(bd)
            ds_p = (wdp, bdp)
        else:
            ds_p = None
        blocks_p.append({"convs": convs_p, "downsample": ds_p})
    wl, bl = params["last"]
    Ci, Co = wl.shape
    Cip, Cop = _round_up(Ci, 128), _round_up(Co, 128)
    wlp = jnp.zeros((Cip, Cop), jnp.float32).at[:Ci, :Co].set(wl).astype(jnp.bfloat16)
    blp = jnp.zeros((1, Cop), jnp.float32).at[:, :Co].set(bl)
    return {"blocks": blocks_p, "last": (wlp, blp, Co)}


# ---------------------------------------------------------------------------
# Forward pass: groups of fused TemporalBlocks, final Linear fused into the last group
# ---------------------------------------------------------------------------

def tcn_forward(x_nct, params_p, *, kernel_size, t_tile=None):
    """x_nct: (B, C_in, T) — PyTorch Conv1d layout.  Returns (B, T, output_size) f32."""
    # TODO(synk): mask path not implemented (forward is run with mask=None).
    B, Cin, T = x_nct.shape

    # Max causal halo across all blocks (halo must fit in one time tile).
    max_shift = 1
    for blk in params_p["blocks"]:
        for (_, _, d, _, _) in blk["convs"]:
            max_shift = max(max_shift, (kernel_size - 1) * d)

    if t_tile is None:
        # Large tiles amortize the ~0.35 us/grid-step overhead; multiple of 16 (bf16 sublane packing).
        base = 512 if T >= 512 else _round_up(T, 16)
        t_tile = max(base, _round_up(max_shift, 16))
    assert t_tile % 16 == 0 and max_shift <= t_tile, "dilation halo exceeds time tile"
    Tp = _round_up(T, t_tile)

    Cip = _round_up(Cin, 128)
    h = jnp.transpose(x_nct, (0, 2, 1)).astype(jnp.bfloat16)          # (B, T, C)
    h = jnp.pad(h, ((0, 0), (0, Tp - T), (0, Cip - Cin)))             # one-time prep pad

    im2col = not _is_v5e()

    # Group consecutive blocks so each fused pallas_call's resident weights stay well under VMEM;
    # at typical TCN widths the whole network is a single group (zero intermediate HBM traffic).
    budget = 6 << 20  # ~6 MiB resident weights per group (double-buffered by the pipeline)
    groups, cur_group, cur_bytes = [], [], 0
    for blk in params_p["blocks"]:
        wbytes = sum(int(c[0].size) * 2 + int(c[1].size) * 4 for c in blk["convs"])
        if blk["downsample"] is not None:
            wbytes += int(blk["downsample"][0].size) * 2 + int(blk["downsample"][1].size) * 4
        if cur_group and cur_bytes + wbytes > budget:
            groups.append(cur_group)
            cur_group, cur_bytes = [], 0
        cur_group.append(blk)
        cur_bytes += wbytes
    groups.append(cur_group)

    wl, bl, out_size = params_p["last"]
    for gi, g in enumerate(groups):
        is_last = gi == len(groups) - 1
        h = fused_tcn_group(h, g, (wl, bl) if is_last else None,
                            kernel_size=kernel_size, t_tile=t_tile, im2col=im2col)

    return h[:, :T, :out_size]                                        # .float() already satisfied


# ---------------------------------------------------------------------------
# Pure-JAX reference (mirrors the same bf16 rounding points) for correctness
# ---------------------------------------------------------------------------

def tcn_reference(x_nct, params, *, kernel_size):
    f32, bf16 = jnp.float32, jnp.bfloat16
    K = kernel_size
    h = jnp.transpose(x_nct, (0, 2, 1)).astype(bf16)
    B, T, _ = h.shape
    for blk in params["blocks"]:
        x_in = h
        cur = h
        cur_f32 = None
        for (w, b, d) in blk["convs"]:
            Co = w.shape[2]
            acc = jnp.zeros((B, T, Co), f32)
            for k in range(K):
                s = (K - 1 - k) * d
                shifted = jnp.pad(cur, ((0, 0), (s, 0), (0, 0)))[:, :T, :]
                acc = acc + jnp.einsum("btc,co->bto", shifted.astype(bf16),
                                       w[k].astype(bf16),
                                       preferred_element_type=f32)
            acc = acc + b[None].astype(f32)
            cur_f32 = jax.nn.relu(acc)
            cur = cur_f32.astype(bf16)
        if blk["downsample"] is not None:
            wd, bd = blk["downsample"]
            res = jnp.einsum("btc,co->bto", x_in, wd.astype(bf16),
                             preferred_element_type=f32) + bd[None].astype(f32)
        else:
            res = x_in.astype(f32)
        h = jax.nn.relu(cur_f32 + res).astype(bf16)
    wl, bl = params["last"]
    return jnp.einsum("btc,co->bto", h, wl.astype(bf16),
                      preferred_element_type=f32) + bl[None].astype(f32)


# ---------------------------------------------------------------------------

if __name__ == "__main__":
    def run_case(name, *, B, C_IN, T, OUTPUT_SIZE, NUM_CHANNELS, KERNEL_SIZE,
                 NUM_OF_CONVS, t_tile=None, seed=0):
        key = jax.random.PRNGKey(seed)
        key, kx = jax.random.split(key)
        x = jax.random.normal(kx, (B, C_IN, T), jnp.float32)  # NCT, as fed to the Conv1d stack
        params = init_tcn_params(key, input_size=C_IN, output_size=OUTPUT_SIZE,
                                 num_channels=NUM_CHANNELS, kernel_size=KERNEL_SIZE,
                                 num_of_convs=NUM_OF_CONVS)
        params_p = prepare_pallas_params(params, kernel_size=KERNEL_SIZE)
        out = tcn_forward(x, params_p, kernel_size=KERNEL_SIZE, t_tile=t_tile)
        out = jax.block_until_ready(out)
        ref = tcn_reference(x, params, kernel_size=KERNEL_SIZE)
        assert out.shape == (B, T, OUTPUT_SIZE), (name, out.shape)
        max_err = float(jnp.max(jnp.abs(out - ref)))
        assert jnp.allclose(out, ref, atol=3e-3, rtol=3e-3), \
            f"{name}: mismatch vs reference (max abs err {max_err})"

    # Config consistent with:
    #   TCN(input_size=8, output_size=4, num_channels=[16, 16], conv_type='causal',
    #       num_of_convs=2, kernel_size=2, residual=True, last_layer='linear')
    run_case("default", B=2, C_IN=8, T=16, OUTPUT_SIZE=4,
             NUM_CHANNELS=[16, 16], KERNEL_SIZE=2, NUM_OF_CONVS=2)

    # Deeper config: K=3 (validates the K>2 tap/weight ordering), three blocks with downsamples,
    # NT=2 time tiles (validates the cross-tile causal halo carry) and trailing time padding.
    run_case("k3_multitile", B=2, C_IN=8, T=56, OUTPUT_SIZE=6,
             NUM_CHANNELS=[16, 24, 16], KERNEL_SIZE=3, NUM_OF_CONVS=2, t_tile=32)

    print("KERNEL_OK")
</pallas_src>

<mosaic_0001>
module attributes {stable_mosaic.version = 11 : i64} {
  func.func @kernel(%arg0: i32, %arg1: i32, %arg2: memref<1x16x128xbf16, #tpu.memory_space<vmem>>, %arg3: memref<256x128xbf16, #tpu.memory_space<vmem>>, %arg4: memref<1x128xf32, #tpu.memory_space<vmem>>, %arg5: memref<256x128xbf16, #tpu.memory_space<vmem>>, %arg6: memref<1x128xf32, #tpu.memory_space<vmem>>, %arg7: memref<128x128xbf16, #tpu.memory_space<vmem>>, %arg8: memref<1x128xf32, #tpu.memory_space<vmem>>, %arg9: memref<256x128xbf16, #tpu.memory_space<vmem>>, %arg10: memref<1x128xf32, #tpu.memory_space<vmem>>, %arg11: memref<256x128xbf16, #tpu.memory_space<vmem>>, %arg12: memref<1x128xf32, #tpu.memory_space<vmem>>, %arg13: memref<128x128xbf16, #tpu.memory_space<vmem>>, %arg14: memref<1x128xf32, #tpu.memory_space<vmem>>, %arg15: memref<1x16x128xf32, #tpu.memory_space<vmem>>, %arg16: memref<16x128xbf16, #tpu.memory_space<vmem>>, %arg17: memref<16x128xbf16, #tpu.memory_space<vmem>>, %arg18: memref<16x128xbf16, #tpu.memory_space<vmem>>, %arg19: memref<16x128xbf16, #tpu.memory_space<vmem>>) attributes {dimension_semantics = [#tpu.dimension_semantics<parallel>, #tpu.dimension_semantics<arbitrary>], iteration_bounds = array<i64: 2, 1>, scalar_prefetch = 0 : i64, scratch_operands = 4 : i64, tpu.core_type = #tpu.core_type<tc>, window_params = [{transform_indices = @transform_0, window_bounds = array<i64: 1, 16, 128>}, {pipeline_mode = #tpu.pipeline_mode<synchronous>, transform_indices = @transform_1, window_bounds = array<i64: 256, 128>}, {pipeline_mode = #tpu.pipeline_mode<synchronous>, transform_indices = @transform_2, window_bounds = array<i64: 1, 128>}, {pipeline_mode = #tpu.pipeline_mode<synchronous>, transform_indices = @transform_3, window_bounds = array<i64: 256, 128>}, {pipeline_mode = #tpu.pipeline_mode<synchronous>, transform_indices = @transform_4, window_bounds = array<i64: 1, 128>}, {pipeline_mode = #tpu.pipeline_mode<synchronous>, transform_indices = @transform_5, window_bounds = array<i64: 128, 128>}, {pipeline_mode = #tpu.pipeline_mode<synchronous>, transform_indices = @transform_6, window_bounds = array<i64: 1, 128>}, {pipeline_mode = #tpu.pipeline_mode<synchronous>, transform_indices = @transform_7, window_bounds = array<i64: 256, 128>}, {pipeline_mode = #tpu.pipeline_mode<synchronous>, transform_indices = @transform_8, window_bounds = array<i64: 1, 128>}, {pipeline_mode = #tpu.pipeline_mode<synchronous>, transform_indices = @transform_9, window_bounds = array<i64: 256, 128>}, {pipeline_mode = #tpu.pipeline_mode<synchronous>, transform_indices = @transform_10, window_bounds = array<i64: 1, 128>}, {pipeline_mode = #tpu.pipeline_mode<synchronous>, transform_indices = @transform_11, window_bounds = array<i64: 128, 128>}, {pipeline_mode = #tpu.pipeline_mode<synchronous>, transform_indices = @transform_12, window_bounds = array<i64: 1, 128>}, {transform_indices = @transform_13, window_bounds = array<i64: 1, 16, 128>}]} {
    %c0_i32 = arith.constant 0 : i32
    %0 = arith.cmpi eq, %arg1, %c0_i32 : i32
    %1 = arith.extui %0 : i1 to i32
    %c0_i32_0 = arith.constant 0 : i32
    %2 = arith.cmpi ne, %1, %c0_i32_0 : i32
    scf.if %2 {
      %cst_61 = arith.constant 0.000000e+00 : bf16
      %102 = vector.broadcast %cst_61 : bf16 to vector<16x128xbf16>
      %c0_62 = arith.constant 0 : index
      %c0_63 = arith.constant 0 : index
      %103 = vector.load %arg16[%c0_62, %c0_63] : memref<16x128xbf16, #tpu.memory_space<vmem>>, vector<16x128xbf16>
      tpu.vector_store %arg16[%c0_62, %c0_63], %102 {strides = array<i32>} : memref<16x128xbf16, #tpu.memory_space<vmem>>, vector<16x128xbf16>,
      %cst_64 = arith.constant 0.000000e+00 : bf16
      %104 = vector.broadcast %cst_64 : bf16 to vector<16x128xbf16>
      %c0_65 = arith.constant 0 : index
      %c0_66 = arith.constant 0 : index
      %105 = vector.load %arg17[%c0_65, %c0_66] : memref<16x128xbf16, #tpu.memory_space<vmem>>, vector<16x128xbf16>
      tpu.vector_store %arg17[%c0_65, %c0_66], %104 {strides = array<i32>} : memref<16x128xbf16, #tpu.memory_space<vmem>>, vector<16x128xbf16>,
      %cst_67 = arith.constant 0.000000e+00 : bf16
      %106 = vector.broadcast %cst_67 : bf16 to vector<16x128xbf16>
      %c0_68 = arith.constant 0 : index
      %c0_69 = arith.constant 0 : index
      %107 = vector.load %arg18[%c0_68, %c0_69] : memref<16x128xbf16, #tpu.memory_space<vmem>>, vector<16x128xbf16>
      tpu.vector_store %arg18[%c0_68, %c0_69], %106 {strides = array<i32>} : memref<16x128xbf16, #tpu.memory_space<vmem>>, vector<16x128xbf16>,
      %cst_70 = arith.constant 0.000000e+00 : bf16
      %108 = vector.broadcast %cst_70 : bf16 to vector<16x128xbf16>
      %c0_71 = arith.constant 0 : index
      %c0_72 = arith.constant 0 : index
      %109 = vector.load %arg19[%c0_71, %c0_72] : memref<16x128xbf16, #tpu.memory_space<vmem>>, vector<16x128xbf16>
      tpu.vector_store %arg19[%c0_71, %c0_72], %108 {strides = array<i32>} : memref<16x128xbf16, #tpu.memory_space<vmem>>, vector<16x128xbf16>,
    } else {
    }
    %3 = tpu.iota {dimensions = array<i32: 0>} : vector<16x1xi32>
    %c0 = arith.constant 0 : index
    %c0_1 = arith.constant 0 : index
    %c0_2 = arith.constant 0 : index
    %4 = vector.load %arg2[%c0, %c0_1, %c0_2] : memref<1x16x128xbf16, #tpu.memory_space<vmem>>, vector<1x16x128xbf16>
    %5 = vector.shape_cast %4 : vector<1x16x128xbf16> to vector<16x128xbf16>
    %c0_3 = arith.constant 0 : index
    %c0_4 = arith.constant 0 : index
    %6 = vector.load %arg16[%c0_3, %c0_4] : memref<16x128xbf16, #tpu.memory_space<vmem>>, vector<16x128xbf16>
    %c0_5 = arith.constant 0 : index
    %c0_6 = arith.constant 0 : index
    %7 = vector.load %arg16[%c0_5, %c0_6] : memref<16x128xbf16, #tpu.memory_space<vmem>>, vector<16x128xbf16>
    tpu.vector_store %arg16[%c0_5, %c0_6], %5 {strides = array<i32>} : memref<16x128xbf16, #tpu.memory_space<vmem>>, vector<16x128xbf16>,
    %c15_i32 = arith.constant 15 : i32
    %8 = vector.broadcast %c15_i32 : i32 to vector<16x1xi32>
    %9 = arith.cmpi sge, %3, %8 : vector<16x1xi32>
    %10 = vector.shape_cast %9 : vector<16x1xi1> to vector<16x1xi1>
    %11 = vector.broadcast %10 : vector<16x1xi1> to vector<16x128xi1>
    %12 = arith.select %11, %6, %5 : vector<16x128xi1>, vector<16x128xbf16>
    %13 = arith.extf %12 : vector<16x128xbf16> to vector<16x128xf32>
    %c1_i32 = arith.constant 1 : i32
    %14 = tpu.dynamic_rotate %13 by %c1_i32 dim 0 : vector<16x128xf32>, i32 -> vector<16x128xf32>
    %15 = arith.truncf %14 : vector<16x128xf32> to vector<16x128xbf16>
    %16 = tpu.concatenate %15, %5 in 1 : vector<16x128xbf16>, vector<16x128xbf16> -> vector<16x256xbf16>
    %c0_7 = arith.constant 0 : index
    %c0_8 = arith.constant 0 : index
    %17 = vector.load %arg3[%c0_7, %c0_8] : memref<256x128xbf16, #tpu.memory_space<vmem>>, vector<256x128xbf16>
    %cst = arith.constant dense<0.000000e+00> : vector<16x128xf32>
    %18 = tpu.matmul %16, %17, %cst {dimension_numbers = #tpu.dot_dimension_numbers<[1], [0], [0], [1], [0, 0, 1, 1], [], []>} : vector<16x256xbf16>, vector<256x128xbf16>, vector<16x128xf32> -> vector<16x128xf32>
    %c0_9 = arith.constant 0 : index
    %c0_10 = arith.constant 0 : index
    %19 = vector.load %arg4[%c0_9, %c0_10] : memref<1x128xf32, #tpu.memory_space<vmem>>, vector<1x128xf32>
    %20 = vector.broadcast %19 : vector<1x128xf32> to vector<16x128xf32>
    %21 = arith.addf %18, %20 : vector<16x128xf32>
    %cst_11 = arith.constant 0.000000e+00 : f32
    %22 = vector.broadcast %cst_11 : f32 to vector<16x128xf32>
    %23 = arith.maximumf %21, %22 : vector<16x128xf32>
    %24 = arith.truncf %23 : vector<16x128xf32> to vector<16x128xbf16>
    %c0_12 = arith.constant 0 : index
    %c0_13 = arith.constant 0 : index
    %25 = vector.load %arg17[%c0_12, %c0_13] : memref<16x128xbf16, #tpu.memory_space<vmem>>, vector<16x128xbf16>
    %c0_14 = arith.constant 0 : index
    %c0_15 = arith.constant 0 : index
    %26 = vector.load %arg17[%c0_14, %c0_15] : memref<16x128xbf16, #tpu.memory_space<vmem>>, vector<16x128xbf16>
    tpu.vector_store %arg17[%c0_14, %c0_15], %24 {strides = array<i32>} : memref<16x128xbf16, #tpu.memory_space<vmem>>, vector<16x128xbf16>,
    %c15_i32_16 = arith.constant 15 : i32
    %27 = vector.broadcast %c15_i32_16 : i32 to vector<16x1xi32>
    %28 = arith.cmpi sge, %3, %27 : vector<16x1xi32>
    %29 = vector.shape_cast %28 : vector<16x1xi1> to vector<16x1xi1>
    %30 = vector.broadcast %29 : vector<16x1xi1> to vector<16x128xi1>
    %31 = arith.select %30, %25, %24 : vector<16x128xi1>, vector<16x128xbf16>
    %32 = arith.extf %31 : vector<16x128xbf16> to vector<16x128xf32>
    %c1_i32_17 = arith.constant 1 : i32
    %33 = tpu.dynamic_rotate %32 by %c1_i32_17 dim 0 : vector<16x128xf32>, i32 -> vector<16x128xf32>
    %34 = arith.truncf %33 : vector<16x128xf32> to vector<16x128xbf16>
    %35 = tpu.concatenate %34, %24 in 1 : vector<16x128xbf16>, vector<16x128xbf16> -> vector<16x256xbf16>
    %c0_18 = arith.constant 0 : index
    %c0_19 = arith.constant 0 : index
    %36 = vector.load %arg5[%c0_18, %c0_19] : memref<256x128xbf16, #tpu.memory_space<vmem>>, vector<256x128xbf16>
    %cst_20 = arith.constant dense<0.000000e+00> : vector<16x128xf32>
    %37 = tpu.matmul %35, %36, %cst_20 {dimension_numbers = #tpu.dot_dimension_numbers<[1], [0], [0], [1], [0, 0, 1, 1], [], []>} : vector<16x256xbf16>, vector<256x128xbf16>, vector<16x128xf32> -> vector<16x128xf32>
    %c0_21 = arith.constant 0 : index
    %c0_22 = arith.constant 0 : index
    %38 = vector.load %arg6[%c0_21, %c0_22] : memref<1x128xf32, #tpu.memory_space<vmem>>, vector<1x128xf32>
    %39 = vector.broadcast %38 : vector<1x128xf32> to vector<16x128xf32>
    %40 = arith.addf %37, %39 : vector<16x128xf32>
    %cst_23 = arith.constant 0.000000e+00 : f32
    %41 = vector.broadcast %cst_23 : f32 to vector<16x128xf32>
    %42 = arith.maximumf %40, %41 : vector<16x128xf32>
    %c0_24 = arith.constant 0 : index
    %c0_25 = arith.constant 0 : index
    %43 = vector.load %arg7[%c0_24, %c0_25] : memref<128x128xbf16, #tpu.memory_space<vmem>>, vector<128x128xbf16>
    %cst_26 = arith.constant dense<0.000000e+00> : vector<16x128xf32>
    %44 = tpu.matmul %5, %43, %cst_26 {dimension_numbers = #tpu.dot_dimension_numbers<[1], [0], [0], [1], [0, 0, 1, 1], [], []>} : vector<16x128xbf16>, vector<128x128xbf16>, vector<16x128xf32> -> vector<16x128xf32>
    %c0_27 = arith.constant 0 : index
    %c0_28 = arith.constant 0 : index
    %45 = vector.load %arg8[%c0_27, %c0_28] : memref<1x128xf32, #tpu.memory_space<vmem>>, vector<1x128xf32>
    %46 = vector.broadcast %45 : vector<1x128xf32> to vector<16x128xf32>
    %47 = arith.addf %44, %46 : vector<16x128xf32>
    %48 = arith.addf %42, %47 : vector<16x128xf32>
    %cst_29 = arith.constant 0.000000e+00 : f32
    %49 = vector.broadcast %cst_29 : f32 to vector<16x128xf32>
    %50 = arith.maximumf %48, %49 : vector<16x128xf32>
    %51 = arith.truncf %50 : vector<16x128xf32> to vector<16x128xbf16>
    %c0_30 = arith.constant 0 : index
    %c0_31 = arith.constant 0 : index
    %52 = vector.load %arg18[%c0_30, %c0_31] : memref<16x128xbf16, #tpu.memory_space<vmem>>, vector<16x128xbf16>
    %c0_32 = arith.constant 0 : index
    %c0_33 = arith.constant 0 : index
    %53 = vector.load %arg18[%c0_32, %c0_33] : memref<16x128xbf16, #tpu.memory_space<vmem>>, vector<16x128xbf16>
    tpu.vector_store %arg18[%c0_32, %c0_33], %51 {strides = array<i32>} : memref<16x128xbf16, #tpu.memory_space<vmem>>, vector<16x128xbf16>,
    %c14_i32 = arith.constant 14 : i32
    %54 = vector.broadcast %c14_i32 : i32 to vector<16x1xi32>
    %55 = arith.cmpi sge, %3, %54 : vector<16x1xi32>
    %56 = vector.shape_cast %55 : vector<16x1xi1> to vector<16x1xi1>
    %57 = vector.broadcast %56 : vector<16x1xi1> to vector<16x128xi1>
    %58 = arith.select %57, %52, %51 : vector<16x128xi1>, vector<16x128xbf16>
    %59 = arith.extf %58 : vector<16x128xbf16> to vector<16x128xf32>
    %c2_i32 = arith.constant 2 : i32
    %60 = tpu.dynamic_rotate %59 by %c2_i32 dim 0 : vector<16x128xf32>, i32 -> vector<16x128xf32>
    %61 = arith.truncf %60 : vector<16x128xf32> to vector<16x128xbf16>
    %62 = tpu.concatenate %61, %51 in 1 : vector<16x128xbf16>, vector<16x128xbf16> -> vector<16x256xbf16>
    %c0_34 = arith.constant 0 : index
    %c0_35 = arith.constant 0 : index
    %63 = vector.load %arg9[%c0_34, %c0_35] : memref<256x128xbf16, #tpu.memory_space<vmem>>, vector<256x128xbf16>
    %cst_36 = arith.constant dense<0.000000e+00> : vector<16x128xf32>
    %64 = tpu.matmul %62, %63, %cst_36 {dimension_numbers = #tpu.dot_dimension_numbers<[1], [0], [0], [1], [0, 0, 1, 1], [], []>} : vector<16x256xbf16>, vector<256x128xbf16>, vector<16x128xf32> -> vector<16x128xf32>
    %c0_37 = arith.constant 0 : index
    %c0_38 = arith.constant 0 : index
    %65 = vector.load %arg10[%c0_37, %c0_38] : memref<1x128xf32, #tpu.memory_space<vmem>>, vector<1x128xf32>
    %66 = vector.broadcast %65 : vector<1x128xf32> to vector<16x128xf32>
    %67 = arith.addf %64, %66 : vector<16x128xf32>
    %cst_39 = arith.constant 0.000000e+00 : f32
    %68 = vector.broadcast %cst_39 : f32 to vector<16x128xf32>
    %69 = arith.maximumf %67, %68 : vector<16x128xf32>
    %70 = arith.truncf %69 : vector<16x128xf32> to vector<16x128xbf16>
    %c0_40 = arith.constant 0 : index
    %c0_41 = arith.constant 0 : index
    %71 = vector.load %arg19[%c0_40, %c0_41] : memref<16x128xbf16, #tpu.memory_space<vmem>>, vector<16x128xbf16>
    %c0_42 = arith.constant 0 : index
    %c0_43 = arith.constant 0 : index
    %72 = vector.load %arg19[%c0_42, %c0_43] : memref<16x128xbf16, #tpu.memory_space<vmem>>, vector<16x128xbf16>
    tpu.vector_store %arg19[%c0_42, %c0_43], %70 {strides = array<i32>} : memref<16x128xbf16, #tpu.memory_space<vmem>>, vector<16x128xbf16>,
    %c14_i32_44 = arith.constant 14 : i32
    %73 = vector.broadcast %c14_i32_44 : i32 to vector<16x1xi32>
    %74 = arith.cmpi sge, %3, %73 : vector<16x1xi32>
    %75 = vector.shape_cast %74 : vector<16x1xi1> to vector<16x1xi1>
    %76 = vector.broadcast %75 : vector<16x1xi1> to vector<16x128xi1>
    %77 = arith.select %76, %71, %70 : vector<16x128xi1>, vector<16x128xbf16>
    %78 = arith.extf %77 : vector<16x128xbf16> to vector<16x128xf32>
    %c2_i32_45 = arith.constant 2 : i32
    %79 = tpu.dynamic_rotate %78 by %c2_i32_45 dim 0 : vector<16x128xf32>, i32 -> vector<16x128xf32>
    %80 = arith.truncf %79 : vector<16x128xf32> to vector<16x128xbf16>
    %81 = tpu.concatenate %80, %70 in 1 : vector<16x128xbf16>, vector<16x128xbf16> -> vector<16x256xbf16>
    %c0_46 = arith.constant 0 : index
    %c0_47 = arith.constant 0 : index
    %82 = vector.load %arg11[%c0_46, %c0_47] : memref<256x128xbf16, #tpu.memory_space<vmem>>, vector<256x128xbf16>
    %cst_48 = arith.constant dense<0.000000e+00> : vector<16x128xf32>
    %83 = tpu.matmul %81, %82, %cst_48 {dimension_numbers = #tpu.dot_dimension_numbers<[1], [0], [0], [1], [0, 0, 1, 1], [], []>} : vector<16x256xbf16>, vector<256x128xbf16>, vector<16x128xf32> -> vector<16x128xf32>
    %c0_49 = arith.constant 0 : index
    %c0_50 = arith.constant 0 : index
    %84 = vector.load %arg12[%c0_49, %c0_50] : memref<1x128xf32, #tpu.memory_space<vmem>>, vector<1x128xf32>
    %85 = vector.broadcast %84 : vector<1x128xf32> to vector<16x128xf32>
    %86 = arith.addf %83, %85 : vector<16x128xf32>
    %cst_51 = arith.constant 0.000000e+00 : f32
    %87 = vector.broadcast %cst_51 : f32 to vector<16x128xf32>
    %88 = arith.maximumf %86, %87 : vector<16x128xf32>
    %89 = arith.extf %51 : vector<16x128xbf16> to vector<16x128xf32>
    %90 = arith.addf %88, %89 : vector<16x128xf32>
    %cst_52 = arith.constant 0.000000e+00 : f32
    %91 = vector.broadcast %cst_52 : f32 to vector<16x128xf32>
    %92 = arith.maximumf %90, %91 : vector<16x128xf32>
    %93 = arith.truncf %92 : vector<16x128xf32> to vector<16x128xbf16>
    %c0_53 = arith.constant 0 : index
    %c0_54 = arith.constant 0 : index
    %94 = vector.load %arg13[%c0_53, %c0_54] : memref<128x128xbf16, #tpu.memory_space<vmem>>, vector<128x128xbf16>
    %cst_55 = arith.constant dense<0.000000e+00> : vector<16x128xf32>
    %95 = tpu.matmul %93, %94, %cst_55 {dimension_numbers = #tpu.dot_dimension_numbers<[1], [0], [0], [1], [0, 0, 1, 1], [], []>} : vector<16x128xbf16>, vector<128x128xbf16>, vector<16x128xf32> -> vector<16x128xf32>
    %c0_56 = arith.constant 0 : index
    %c0_57 = arith.constant 0 : index
    %96 = vector.load %arg14[%c0_56, %c0_57] : memref<1x128xf32, #tpu.memory_space<vmem>>, vector<1x128xf32>
    %97 = vector.broadcast %96 : vector<1x128xf32> to vector<16x128xf32>
    %98 = arith.addf %95, %97 : vector<16x128xf32>
    %c0_58 = arith.constant 0 : index
    %c0_59 = arith.constant 0 : index
    %c0_60 = arith.constant 0 : index
    %99 = vector.load %arg15[%c0_58, %c0_59, %c0_60] : memref<1x16x128xf32, #tpu.memory_space<vmem>>, vector<1x16x128xf32>
    %100 = vector.shape_cast %99 : vector<1x16x128xf32> to vector<16x128xf32>
    %101 = vector.shape_cast %98 : vector<16x128xf32> to vector<1x16x128xf32>
    tpu.vector_store %arg15[%c0_58, %c0_59, %c0_60], %101 {strides = array<i32>} : memref<1x16x128xf32, #tpu.memory_space<vmem>>, vector<1x16x128xf32>,
    return
  }
  func.func @transform_0(%arg0: i32, %arg1: i32) -> (i32, i32, i32) {
    %c0_i32 = arith.constant 0 : i32
    %c0_i32_0 = arith.constant 0 : i32
    return %arg0, %arg1, %c0_i32 : i32, i32, i32
  }
  func.func @transform_1(%arg0: i32, %arg1: i32) -> (i32, i32) {
    %c0_i32 = arith.constant 0 : i32
    %c0_i32_0 = arith.constant 0 : i32
    %c0_i32_1 = arith.constant 0 : i32
    return %c0_i32, %c0_i32_0 : i32, i32
  }
  func.func @transform_2(%arg0: i32, %arg1: i32) -> (i32, i32) {
    %c0_i32 = arith.constant 0 : i32
    %c0_i32_0 = arith.constant 0 : i32
    %c0_i32_1 = arith.constant 0 : i32
    return %c0_i32, %c0_i32_0 : i32, i32
  }
  func.func @transform_3(%arg0: i32, %arg1: i32) -> (i32, i32) {
    %c0_i32 = arith.constant 0 : i32
    %c0_i32_0 = arith.constant 0 : i32
    %c0_i32_1 = arith.constant 0 : i32
    return %c0_i32, %c0_i32_0 : i32, i32
  }
  func.func @transform_4(%arg0: i32, %arg1: i32) -> (i32, i32) {
    %c0_i32 = arith.constant 0 : i32
    %c0_i32_0 = arith.constant 0 : i32
    %c0_i32_1 = arith.constant 0 : i32
    return %c0_i32, %c0_i32_0 : i32, i32
  }
  func.func @transform_5(%arg0: i32, %arg1: i32) -> (i32, i32) {
    %c0_i32 = arith.constant 0 : i32
    %c0_i32_0 = arith.constant 0 : i32
    %c0_i32_1 = arith.constant 0 : i32
    return %c0_i32, %c0_i32_0 : i32, i32
  }
  func.func @transform_6(%arg0: i32, %arg1: i32) -> (i32, i32) {
    %c0_i32 = arith.constant 0 : i32
    %c0_i32_0 = arith.constant 0 : i32
    %c0_i32_1 = arith.constant 0 : i32
    return %c0_i32, %c0_i32_0 : i32, i32
  }
  func.func @transform_7(%arg0: i32, %arg1: i32) -> (i32, i32) {
    %c0_i32 = arith.constant 0 : i32
    %c0_i32_0 = arith.constant 0 : i32
    %c0_i32_1 = arith.constant 0 : i32
    return %c0_i32, %c0_i32_0 : i32, i32
  }
  func.func @transform_8(%arg0: i32, %arg1: i32) -> (i32, i32) {
    %c0_i32 = arith.constant 0 : i32
    %c0_i32_0 = arith.constant 0 : i32
    %c0_i32_1 = arith.constant 0 : i32
    return %c0_i32, %c0_i32_0 : i32, i32
  }
  func.func @transform_9(%arg0: i32, %arg1: i32) -> (i32, i32) {
    %c0_i32 = arith.constant 0 : i32
    %c0_i32_0 = arith.constant 0 : i32
    %c0_i32_1 = arith.constant 0 : i32
    return %c0_i32, %c0_i32_0 : i32, i32
  }
  func.func @transform_10(%arg0: i32, %arg1: i32) -> (i32, i32) {
    %c0_i32 = arith.constant 0 : i32
    %c0_i32_0 = arith.constant 0 : i32
    %c0_i32_1 = arith.constant 0 : i32
    return %c0_i32, %c0_i32_0 : i32, i32
  }
  func.func @transform_11(%arg0: i32, %arg1: i32) -> (i32, i32) {
    %c0_i32 = arith.constant 0 : i32
    %c0_i32_0 = arith.constant 0 : i32
    %c0_i32_1 = arith.constant 0 : i32
    return %c0_i32, %c0_i32_0 : i32, i32
  }
  func.func @transform_12(%arg0: i32, %arg1: i32) -> (i32, i32) {
    %c0_i32 = arith.constant 0 : i32
    %c0_i32_0 = arith.constant 0 : i32
    %c0_i32_1 = arith.constant 0 : i32
    return %c0_i32, %c0_i32_0 : i32, i32
  }
  func.func @transform_13(%arg0: i32, %arg1: i32) -> (i32, i32, i32) {
    %c0_i32 = arith.constant 0 : i32
    %c0_i32_0 = arith.constant 0 : i32
    return %arg0, %arg1, %c0_i32 : i32, i32, i32
  }
}

</mosaic_0001>

<bundles_post_ra>
// kernel: tpu_custom_call.1
= control target key start
LH: loop header
LB: loop body
LE: loop exit
PB: predicated region body
PF: predicated region fallthrough
CT: control target
= control target key end

     0   :  { %s3087_s0 = inlined_call_operand.hbm [shape: bf16[2,16,128], index: 0, kind: input, shape index: {}]   ;;  %s3088_s1 = inlined_call_operand.hbm [shape: bf16[256,128], index: 1, kind: input, shape index: {}]   ;;  %s3089_s2 = inlined_call_operand.vmem [shape: f32[1,128], index: 2, kind: input, shape index: {}]   ;;  %s3090_s3 = inlined_call_operand.hbm [shape: bf16[256,128], index: 3, kind: input, shape index: {}]   ;;  %s3091_s4 = inlined_call_operand.vmem [shape: f32[1,128], index: 4, kind: input, shape index: {}]   ;;  %s3092_s5 = inlined_call_operand.hbm [shape: bf16[128,128], index: 5, kind: input, shape index: {}]   ;;  %s3093_s6 = inlined_call_operand.vmem [shape: f32[1,128], index: 6, kind: input, shape index: {}]   ;;  %s3094_s7 = inlined_call_operand.hbm [shape: bf16[256,128], index: 7, kind: input, shape index: {}]   ;;  %s3095_s8 = inlined_call_operand.vmem [shape: f32[1,128], index: 8, kind: input, shape index: {}]   ;;  %s3096_s9 = inlined_call_operand.hbm [shape: bf16[256,128], index: 9, kind: input, shape index: {}]   ;;  %s3097_s10 = inlined_call_operand.vmem [shape: f32[1,128], index: 10, kind: input, shape index: {}]   ;;  %s3098_s11 = inlined_call_operand.hbm [shape: bf16[128,128], index: 11, kind: input, shape index: {}]   ;;  %s3099_s12 = inlined_call_operand.vmem [shape: f32[1,128], index: 12, kind: input, shape index: {}]   ;;  %s3100_s13 = inlined_call_operand.hbm [shape: f32[2,16,128], index: 13, kind: output, shape index: {}]  }
   0x1   :  { %3108 = sst [smem:[#allocation25_spill]] %s3088_s1 }
   0x2   :  { %3109 = sst [smem:[#allocation26_spill]] %s3091_s4 }
   0x3   :  { %3110 = sst [smem:[#allocation27_spill]] %s3093_s6 }
   0x4   :  { %3111 = sst [smem:[#allocation28_spill]] %s3095_s8 }
   0x5   :  { %3112 = sst [smem:[#allocation29_spill]] %s3097_s10 }
   0x6   :  { %3113 = sst [smem:[#allocation30_spill]] %s3099_s12 }
   0x7   :  { %3114 = sst [smem:[#allocation31_spill]] %s3100_s13 }
   0x8   :  { %18 = vsyncpa [#allocation7], 0 }
   0x9   :  { %20 = vsyncpa [#allocation7 + $0x1], 0 }
   0xa   :  { %21 = vsyncpa [#allocation10], 0 }
   0xb   :  { %22 = vsyncpa [#allocation13], 0 }
   0xc   :  { %23 = vsyncpa [#allocation16], 0 }
   0xd   :  { %24 = vsyncpa [#allocation8], 0 }
   0xe   :  { %26 = vsyncpa [#allocation8 + $0x1], 0  ;;  %s2624_s25 = smov 0   ;;  %s2626_s26 = smov 0  }
   0xf   :  { %s2628_s27 = smov 0   ;;  %s2630_s28 = smov 0  }
  0x10   :  { %s2632_s29 = smov 0   ;;  %s2634_s30 = smov 0  }
  0x11 LB: > { %3115 = sst [smem:[#allocation24_spill]] %s2529_s28  ;;  %s3101_s14 = sadd.s32 4294967295, %s2537_s30   ;;  %s2537_s30 = sphi %s2634_s30, %s32_s30   ;;  %s2533_s29 = sphi %s2632_s29, %s3149_s29   ;;  %s2529_s28 = sphi %s2630_s28, %s3148_s28   ;;  %s2525_s27 = sphi %s2628_s27, %s3147_s27   ;;  %s2521_s26 = sphi %s2626_s26, %s3146_s26   ;;  %s2517_s25 = sphi %s2624_s25, %s3145_s25  }
  0x12   : > { %p1772_p0 = scmp.ge.s32.totalorder %s2537_s30, 1  ;;  %p2658_p1 = scmp.eq.s32.totalorder %s3101_s14, 0 }
  0x13   : > { %p357_p2 = scmp.lt.s32.totalorder %s2537_s30, 3  ;;  %s2539_s17 = smov [#allocation9]  }
  0x14   : > { %s3116_s15 = scalar_select %p2658_p1, 1, 0 }
  0x15   : > { %p2663_p3 = pnand %p1772_p0, %p357_p2  ;;  %s369_s18 = sshll.u32 %s2539_s17, 4  ;;  %s2667_s18 = int_to_ptr.vmem [resolvable:$true] %s369_s18 }
  0x16   : > { %s2540_s20 = smov [#allocation12]   ;;  %s2541_s22 = smov [#allocation15]  }
  0x17   : > { %s3117_s16 = scalar_select %p2663_p3, 1, 0 }
  0x18   : > { %p2062_p4 = pneg %p2663_p3  ;;  %s401_s21 = sshll.u32 %s2540_s20, 4  ;;  %s2678_s21 = int_to_ptr.vmem [resolvable:$true] %s401_s21 }
  0x19   : > { %s2680_s23 = sshll.u32 %s2541_s22, 4  ;;  %s3119_s1 = sld [smem:[#allocation25_spill]]  ;;  %s434_s23 = int_to_ptr.vmem [resolvable:$true] %s2680_s23 }
  0x1a   : > { %p2674_p6 = pnand %p2062_p4, %p2658_p1 }
  0x1c   : > { %p2690_p8 = pneg %p2674_p6 }
  0x1f   : > { %s2245_s14 = scalar_lea.hbm %s3119_s1, 2048 }
  0x20   : > { %p2246_p7 = scmp.ne.s32.totalorder %s3119_s1, %s2245_s14  ;;  %p2252_p11 = scmp.lt.u32.totalorder %s2245_s14, %s3119_s1 }
  0x22   : > { %p2248_p9 = pnand %p2690_p8, %p2246_p7 }
  0x24   : > { %p2249_p10 = pneg %p2248_p9 }
  0x26   : > { %p2254_p12 = pnand %p2252_p11, %p2249_p10 }
  0x28   : > { %2257 = shalt.err (!%p2254_p12)
}
  0x29   : > { %s2258_s12 = scalar_lea.vmem %s2667_s18, 2048  ;;  %p2266_p4 = scmp.lt.s32.totalorder %s2667_s18, %s2667_s18 }
  0x2a   : > { %p2259_p13 = scmp.ne.s32.totalorder %s2667_s18, %s2258_s12  ;;  %p2267_p5 = scmp.lt.s32.totalorder %s2258_s12, %s2258_s12 }
  0x2c   : > { %p2261_p0 = pnand %p2259_p13, %p2690_p8  ;;  %p2268_p7 = por %p2267_p5, %p2266_p4 }
  0x2e   : > { %p2262_p2 = pneg %p2261_p0 }
  0x30   : > { %p2269_p9 = pnand %p2268_p7, %p2262_p2 }
  0x32   : > { %2272 = shalt.err (!%p2269_p9)
}
  0x33   : > { %s3106_s13 = smov 64   ;;  %s2543_s14 = smov 4  }
  0x34   : > { %2065 = dma.hbm_to_vmem [thread:$0]  (!%p2674_p6), %s3119_s1, 2048, %s2667_s18, [#allocation10], %s3106_s13, %s3106_s13, %s2543_s14  }
  0x35   : > { %s2273_s12 = scalar_lea.hbm %s3092_s5, 1024 }
  0x36   : > { %p2274_p5 = scmp.ne.s32.totalorder %s3092_s5, %s2273_s12  ;;  %p2280_p12 = scmp.lt.u32.totalorder %s2273_s12, %s3092_s5 }
  0x38   : > { %p2276_p10 = pnand %p2274_p5, %p2690_p8 }
  0x3a   : > { %p2277_p11 = pneg %p2276_p10 }
  0x3c   : > { %p2282_p13 = pnand %p2280_p12, %p2277_p11 }
  0x3e   : > { %2285 = shalt.err (!%p2282_p13)
}
  0x3f   : > { %s2286_s18 = scalar_lea.vmem %s2678_s21, 1024  ;;  %p2294_p7 = scmp.lt.s32.totalorder %s2678_s21, %s2678_s21 }
  0x40   : > { %p2287_p0 = scmp.ne.s32.totalorder %s2678_s21, %s2286_s18  ;;  %p2295_p9 = scmp.lt.s32.totalorder %s2286_s18, %s2286_s18 }
  0x42   : > { %p2289_p2 = pnand %p2287_p0, %p2690_p8  ;;  %p2296_p5 = por %p2295_p9, %p2294_p7 }
  0x44   : > { %p2290_p4 = pneg %p2289_p2 }
  0x46   : > { %p2297_p10 = pnand %p2296_p5, %p2290_p4 }
  0x48   : > { %2300 = shalt.err (!%p2297_p10)
}
  0x49   : > { %2071 = dma.hbm_to_vmem [thread:$0]  (!%p2674_p6), %s3092_s5, 1024, %s2678_s21, [#allocation13], %s3106_s13, %s3106_s13, %s2543_s14  }
  0x4a   : > { %s2301_s24 = scalar_lea.hbm %s3096_s9, 2048 }
  0x4b   : > { %p2302_p11 = scmp.ne.s32.totalorder %s3096_s9, %s2301_s24  ;;  %p2308_p0 = scmp.lt.u32.totalorder %s2301_s24, %s3096_s9 }
  0x4d   : > { %p2304_p12 = pnand %p2302_p11, %p2690_p8 }
  0x4f   : > { %p2305_p13 = pneg %p2304_p12 }
  0x51   : > { %p2310_p2 = pnand %p2308_p0, %p2305_p13 }
  0x53   : > { %2313 = shalt.err (!%p2310_p2)
}
  0x54   : > { %s2314_s18 = scalar_lea.vmem %s434_s23, 2048  ;;  %p2322_p5 = scmp.lt.s32.totalorder %s434_s23, %s434_s23 }
  0x55   : > { %p2315_p4 = scmp.ne.s32.totalorder %s434_s23, %s2314_s18  ;;  %p2323_p10 = scmp.lt.s32.totalorder %s2314_s18, %s2314_s18 }
  0x57   : > { %p2317_p7 = pnand %p2315_p4, %p2690_p8  ;;  %p2324_p3 = por %p2323_p10, %p2322_p5 }
  0x59   : > { %p2318_p9 = pneg %p2317_p7 }
  0x5b   : > { %p2325_p1 = pnand %p2324_p3, %p2318_p9 }
  0x5d   : > { %2328 = shalt.err (!%p2325_p1)
}
  0x5e   : > { %2077 = dma.hbm_to_vmem [thread:$0]  (!%p2674_p6), %s3096_s9, 2048, %s434_s23, [#allocation16], %s3106_s13, %s3106_s13, %s2543_s14  }
  0x5f   : > { %s2544_s6 = smov [#allocation11]   ;;  %s2545_s10 = smov [#allocation14]  }
  0x60   : > { %s385_s8 = sshll.u32 %s2544_s6, 4  ;;  %s417_s24 = sshll.u32 %s2545_s10, 4  ;;  %s386_s8 = int_to_ptr.vmem [resolvable:$true] %s385_s8  ;;  %s418_s24 = int_to_ptr.vmem [resolvable:$true] %s417_s24 }
  0x61   : > { %s2329_s22 = scalar_lea.hbm %s3090_s3, 2048 }
  0x62   : > { %p2330_p1 = scmp.ne.s32.totalorder %s3090_s3, %s2329_s22  ;;  %p2336_p12 = scmp.lt.u32.totalorder %s2329_s22, %s3090_s3 }
  0x64   : > { %p2332_p3 = pnand %p2330_p1, %p2690_p8 }
  0x66   : > { %p2333_p11 = pneg %p2332_p3 }
  0x68   : > { %p2338_p13 = pnand %p2336_p12, %p2333_p11 }
  0x6a   : > { %2341 = shalt.err (!%p2338_p13)
}
  0x6b   : > { %s2342_s23 = scalar_lea.vmem %s386_s8, 2048  ;;  %p2350_p7 = scmp.lt.s32.totalorder %s386_s8, %s386_s8 }
  0x6c   : > { %p2343_p0 = scmp.ne.s32.totalorder %s386_s8, %s2342_s23  ;;  %p2351_p9 = scmp.lt.s32.totalorder %s2342_s23, %s2342_s23 }
  0x6e   : > { %p2345_p2 = pnand %p2343_p0, %p2690_p8  ;;  %p2352_p5 = por %p2351_p9, %p2350_p7 }
  0x70   : > { %p2346_p4 = pneg %p2345_p2 }
  0x72   : > { %p2353_p10 = pnand %p2352_p5, %p2346_p4 }
  0x74   : > { %2356 = shalt.err (!%p2353_p10)
}
  0x75   : > { %2068 = dma.hbm_to_vmem [thread:$0]  (!%p2674_p6), %s3090_s3, 2048, %s386_s8, [#allocation10], %s3106_s13, %s3106_s13, %s2543_s14  }
  0x76   : > { %s2357_s17 = scalar_lea.hbm %s3094_s7, 2048 }
  0x77   : > { %p2358_p1 = scmp.ne.s32.totalorder %s3094_s7, %s2357_s17  ;;  %p2364_p12 = scmp.lt.u32.totalorder %s2357_s17, %s3094_s7 }
  0x79   : > { %p2360_p3 = pnand %p2358_p1, %p2690_p8 }
  0x7b   : > { %p2361_p11 = pneg %p2360_p3 }
  0x7d   : > { %p2366_p13 = pnand %p2364_p12, %p2361_p11 }
  0x7f   : > { %2369 = shalt.err (!%p2366_p13)
}
  0x80   : > { %s2370_s21 = scalar_lea.vmem %s418_s24, 2048  ;;  %p2378_p7 = scmp.lt.s32.totalorder %s418_s24, %s418_s24 }
  0x81   : > { %p2371_p0 = scmp.ne.s32.totalorder %s418_s24, %s2370_s21  ;;  %p2379_p9 = scmp.lt.s32.totalorder %s2370_s21, %s2370_s21 }
  0x83   : > { %p2373_p2 = pnand %p2371_p0, %p2690_p8  ;;  %p2380_p5 = por %p2379_p9, %p2378_p7 }
  0x85   : > { %p2374_p4 = pneg %p2373_p2 }
  0x87   : > { %p2381_p10 = pnand %p2380_p5, %p2374_p4 }
  0x89   : > { %2384 = shalt.err (!%p2381_p10)
}
  0x8a   : > { %2074 = dma.hbm_to_vmem [thread:$0]  (!%p2674_p6), %s3094_s7, 2048, %s418_s24, [#allocation13], %s3106_s13, %s3106_s13, %s2543_s14  }
  0x8b   : > { %s2546_s1 = smov [#allocation17]   ;;  %s2385_s17 = scalar_lea.hbm %s3098_s11, 1024 }
  0x8c   : > { %s449_s4 = sshll.u32 %s2546_s1, 4  ;;  %p2386_p1 = scmp.ne.s32.totalorder %s3098_s11, %s2385_s17  ;;  %s450_s4 = int_to_ptr.vmem [resolvable:$true] %s449_s4 }
  0x8d   : > { %p2392_p12 = scmp.lt.u32.totalorder %s2385_s17, %s3098_s11 }
  0x8e   : > { %p2388_p3 = pnand %p2386_p1, %p2690_p8 }
  0x90   : > { %p2389_p11 = pneg %p2388_p3 }
  0x92   : > { %p2394_p13 = pnand %p2392_p12, %p2389_p11 }
  0x94   : > { %2397 = shalt.err (!%p2394_p13)
}
  0x95   : > { %s2398_s24 = scalar_lea.vmem %s450_s4, 1024  ;;  %p2406_p7 = scmp.lt.s32.totalorder %s450_s4, %s450_s4 }
  0x96   : > { %p2399_p0 = scmp.ne.s32.totalorder %s450_s4, %s2398_s24  ;;  %p2407_p9 = scmp.lt.s32.totalorder %s2398_s24, %s2398_s24 }
  0x98   : > { %p2401_p2 = pnand %p2399_p0, %p2690_p8  ;;  %p2408_p5 = por %p2407_p9, %p2406_p7 }
  0x9a   : > { %p2402_p4 = pneg %p2401_p2 }
  0x9c   : > { %p2409_p10 = pnand %p2408_p5, %p2402_p4 }
  0x9e   : > { %2412 = shalt.err (!%p2409_p10)
}
  0x9f   : > { %2080 = dma.hbm_to_vmem [thread:$0]  (!%p2674_p6), %s3098_s11, 1024, %s450_s4, [#allocation16], %s3106_s13, %s3106_s13, %s2543_s14  }
  0xa0   : > { %s1771_s28 = sadd.s32 4294967294, %s2537_s30   ;;  %s44_s19 = sadd.s32 1, %s2533_s29 }
  0xa1   : > { %p46_p8 = scmp.ge.s32.totalorder %s44_s19, 2  ;;  %s53_s23 = sadd.s32 1, %s2525_s27 }
  0xa2   : > { %p60_p1 = scmp.ne.s32.totalorder %s2525_s27, %s2521_s26  ;;  %p61_p3 = scmp.eq.s32.totalorder %s2537_s30, 0 }
  0xa3   : > { %s3151_s19 = smov (%p46_p8, %s44_s19), 0  ;;  %p66_p12 = scmp.ne.s32.totalorder %s2521_s26, %s2517_s25 }
  0xa4   : > { %p2833_p11 = por %p61_p3, %p60_p1  ;;  %s48_s4 = ssub.s32 %s2533_s29, %s3151_s19 }
  0xa5   : > { %s3122_s6 = sadd.s32 4294967295, %s2537_s30   ;;  %p51_p13 = scmp.eq.s32.totalorder %s48_s4, 0 }
  0xa6   : > { %p344_p6 = scmp.eq.s32.totalorder %s3122_s6, 1  ;;  %p3123_p0 = scmp.ne.s32.totalorder %s3116_s15, 0 }
  0xa7   : > { %p350_p7 = scmp.eq.s32.totalorder %s1771_s28, 1  ;;  %p2095_p5 = scmp.lt.s32.totalorder %s2537_s30, 2 }
  0xa8   : > { %p2845_p2 = por %p3123_p0, %p66_p12  ;;  %p2849_p4 = por %p344_p6, %p60_p1 }
  0xa9   : > { %s2854_s20 = scalar_select %p51_p13, %s2525_s27, %s53_s23  }
  0xaa   : > { %s3125_s17 = scalar_select %p2849_p4, 1, 0 }
  0xab   : > { %p2856_p9 = por %p350_p7, %p66_p12  ;;  %s466_s12 = sand.u32 1, %s2525_s27  }
  0xac   : > { %s1886_s18 = sshll.u32 %s2533_s29, 7  ;;  %s1780_s24 = sshll.u32 %s466_s12, 3 }
  0xad   : > { %s3126_s22 = scalar_select %p2856_p9, 1, 0 }
  0xae   : > { %s2866_s4 = scalar_lea.hbm %s3087_s0, %s1886_s18  ;;  %s470_s28 = scalar_lea.vmem [#allocation6], %s1780_s24 }
  0xaf   : > { %s479_s23 = sshll.u32 %s470_s28, 4  ;;  %p2870_p10 = pnand %p2095_p5, %p2833_p11  ;;  %s2874_s23 = int_to_ptr.vmem [resolvable:$true] %s479_s23 }
  0xb0   : > { %s2876_s13 = scalar_lea.sflag [#allocation7], %s466_s12  ;;  %s2413_s21 = scalar_lea.hbm %s2866_s4, 128 }
  0xb1   : > { %p2414_p8 = scmp.ne.s32.totalorder %s2866_s4, %s2413_s21  ;;  %p2415_p1 = pneg %p2870_p10 }
  0xb2   : > { %s2418_s24 = scalar_lea.hbm %s3087_s0, 256  ;;  %p2419_p11 = scmp.lt.u32.totalorder %s2866_s4, %s3087_s0 }
  0xb3   : > { %p2416_p3 = pnand %p2415_p1, %p2414_p8  ;;  %p2420_p6 = scmp.lt.u32.totalorder %s2418_s24, %s2413_s21 }
  0xb4   : > { %p2422_p0 = scmp.lt.u32.totalorder %s2413_s21, %s2866_s4 }
  0xb5   : > { %p2417_p12 = pneg %p2416_p3  ;;  %p2421_p13 = por %p2420_p6, %p2419_p11 }
  0xb7   : > { %p2423_p7 = por %p2422_p0, %p2421_p13 }
  0xb9   : > { %p2424_p5 = pnand %p2423_p7, %p2417_p12 }
  0xbb   : > { %2427 = shalt.err (!%p2424_p5)
}
  0xbc   : > { %s2428_s12 = scalar_lea.vmem %s2874_s23, 128  ;;  %s2547_s18 = smov [#allocation6]  }
  0xbd   : > { %p2429_p8 = scmp.ne.s32.totalorder %s2874_s23, %s2428_s12  ;;  %s2433_s1 = sshll.u32 %s2547_s18, 4  ;;  %s2434_s1 = int_to_ptr.vmem [resolvable:$false] %s2433_s1 }
  0xbe   : > { %s2435_s8 = scalar_lea.vmem %s2434_s1, 256  ;;  %p2436_p4 = scmp.lt.s32.totalorder %s2874_s23, %s2434_s1 }
  0xbf   : > { %p2431_p3 = pnand %p2429_p8, %p2415_p1  ;;  %p2437_p11 = scmp.lt.s32.totalorder %s2435_s8, %s2428_s12 }
  0xc1   : > { %p2432_p9 = pneg %p2431_p3  ;;  %p2438_p6 = por %p2437_p11, %p2436_p4 }
  0xc3   : > { %p2439_p13 = pnand %p2438_p6, %p2432_p9 }
  0xc5   : > { %2442 = shalt.err (!%p2439_p13)
}
  0xc6   : > { %s3128_s21 = smov 64   ;;  %p3129_p1 = scmp.ne.s32.totalorder %s3117_s16, 0 }
  0xc7   : > { %2084 = dma.hbm_to_vmem [thread:$0]  (!%p2870_p10), %s2866_s4, 128, %s2874_s23, %s2876_s13, %s3128_s21, %s3128_s21, %s2543_s14  }
  0xc8   : > { %491 = sbr.rel (%p3129_p1) target bundleno = 1403 (0x57b), region = 72  ;;  %s2910_s24 = sand.u32 (!%p3129_p1), 1, %s2521_s26  }
  0xc9   : > { %s1784_s28 = sshll.u32 (!%p3129_p1), %s2910_s24, 3  ;;  %s494_s12 = scalar_lea.sflag (!%p3129_p1), [#allocation7], %s2910_s24 }
  0xca   : > { %s2914_s18 = scalar_lea.vmem (!%p3129_p1), [#allocation6], %s1784_s28 }
  0xcf   : > { %2496 = dma.done.wait (%p2845_p2), %s494_s12, 128  }
  0xd0   : > { %2498 = vsyncadd (%p2845_p2), %s494_s12, 4294967168  ;;  %p3130_p4 = scmp.ne.s32.totalorder %s3116_s15, 0 }
  0xd2   : > { %2500 = dma.done.wait (%p3130_p4), [#allocation10], 4096  }
  0xd3   : > { %2502 = vsyncadd (%p3130_p4), [#allocation10], 4294963200 }
  0xd4   : > { %2504 = dma.done.wait (%p3130_p4), [#allocation13], 3072  }
  0xd5   : > { %2506 = vsyncadd (%p3130_p4), [#allocation13], 4294964224 }
  0xd6   : > { %2508 = dma.done.wait (%p3130_p4), [#allocation16], 3072  }
  0xd7   : > { %2510 = vsyncadd (%p3130_p4), [#allocation16], 4294964224  ;;  %v2164_v0 = vld [vmem:[#allocation9 + $0x40] sm:$0xff]   ;;  %v2166_v2 = vld [vmem:[#allocation9 + $0x48] sm:$0xff]   ;;  %v577_v3 = vlaneseq  ;;  %vm2548_vm0 = vmmov 0   ;;  %v2549_v15 = vmov 0  }
  0xd8   : > { %v2165_v1 = vld [vmem:[#allocation9] sm:$0xff]   ;;  %1888 = vmatprep.subr.bf16.mxu0 %v2164_v0  ;;  %v2167_v4 = vld [vmem:[#allocation9 + $0x8] sm:$0xff]   ;;  %v2168_v5 = vld [vmem:[#allocation9 + $0x50] sm:$0xff]   ;;  %v2550_v42 = vmov 0.0   ;;  %s3133_s10 = sld [smem:[#allocation26_spill]]  ;;  %s3134_s6 = sld [smem:[#allocation27_spill]] }
  0xd9   : > { %1889 = vmatpush3.bf16.msra.mxu0 %v2165_v1  ;;  %v2932_v6 = vshrl.u32 %v577_v3, 7  ;;  %v2169_v7 = vld [vmem:[#allocation9 + $0x10] sm:$0xff]   ;;  %v2170_v8 = vld [vmem:[#allocation9 + $0x58] sm:$0xff]   ;;  %v2172_v11 = vld [vmem:[#allocation9 + $0x60] sm:$0xff]   ;;  %s3137_s21 = sld [smem:[#allocation28_spill]]  ;;  %s3139_s15 = sld [smem:[#allocation24_spill]] }
  0xda   : > { %1890 = vmatprep.subr.bf16.mxu0 %v2166_v2  ;;  %v2171_v10 = vld [vmem:[#allocation9 + $0x18] sm:$0xff]   ;;  %vm596_vm1 = vmpackc.low %vm2548_vm0, %vm2548_vm0  ;;  %v2173_v12 = vld [vmem:[#allocation9 + $0x20] sm:$0xff]   ;;  %s1791_s16 = sshll.u32 %s2910_s24, 4  ;;  %s1611_s12 = scalar_lea.sflag [#allocation8], %s2910_s24 }
  0xdb   : > { %v579_v9 = vadd.s32 8, %v2932_v6  ;;  %v2174_v13 = vld [vmem:[#allocation9 + $0x68] sm:$0xff]   ;;  %v2938_v14 = vld [vmem:[%s2914_s18] sm:$0xff]   ;;  %v2940_v16 = vsel %vm596_vm1, 65537, %v2549_v15  ;;  %v2181_v19 = vld [vmem:[#allocation11 + $0x40] sm:$0xff]   ;;  %vm609_vm7 = vcmp.lt.s32.totalorder %v2932_v6, 1 }
  0xdc   : > { %v2175_v17 = vld [vmem:[#allocation9 + $0x28] sm:$0xff]   ;;  %780 = vmatprep.mubr.bf16.mxu0 %v2938_v14  ;;  %v2182_v22 = vld [vmem:[#allocation11] sm:$0xff]   ;;  %v2176_v23 = vld [vmem:[#allocation9 + $0x70] sm:$0xff]   ;;  %1910 = vmatprep.subr.bf16.mxu1 %v2181_v19  ;;  %vm1118_vm9 = vcmp.lt.s32.totalorder %v2932_v6, 2  ;;  %s3138_s18 = sld [smem:[#allocation29_spill]]  ;;  %s563_s4 = scalar_lea.vmem [#allocation18], %s1791_s16 }
  0xdd   : > { %1891 = vmatpush3.bf16.msra.mxu0 %v2167_v4  ;;  %vm591_vm2 = vcmp.ge.s32.totalorder %v579_v9, 15  ;;  %vm1100_vm3 = vcmp.ge.s32.totalorder %v579_v9, 14  ;;  %v2177_v25 = vld [vmem:[#allocation9 + $0x30] sm:$0xff]   ;;  %1911 = vmatpush3.bf16.msra.mxu1 %v2182_v22  ;;  %v2184_v27 = vld [vmem:[#allocation11 + $0x48] sm:$0xff]   ;;  %v2178_v28 = vld [vmem:[#allocation9 + $0x78] sm:$0xff]   ;;  %s1626_s23 = sshll.u32 %s563_s4, 4  ;;  %s3033_s23 = int_to_ptr.vmem [resolvable:$true] %s1626_s23 }
  0xde   : > { %1892 = vmatprep.subr.bf16.mxu0 %v2168_v5  ;;  %vm597_vm4 = vmpackc.low %vm591_vm2, %vm591_vm2  ;;  %v2185_v30 = vld [vmem:[#allocation11 + $0x8] sm:$0xff]   ;;  %1912 = vmatprep.subr.bf16.mxu1 %v2184_v27  ;;  %v2187_v33 = vld [vmem:[#allocation11 + $0x50] sm:$0xff]   ;;  %p3142_p9 = scmp.ne.s32.totalorder %s3125_s17, 0 }
  0xdf   : > { %v599_v18 = vsel %vm597_vm4, 65537, %v2549_v15  ;;  %vm1106_vm5 = vmpackc.low %vm1100_vm3, %vm1100_vm3  ;;  %v2179_v34 = vld [vmem:[#allocation9 + $0x38] sm:$0xff]   ;;  %v2188_v37 = vld [vmem:[#allocation11 + $0x10] sm:$0xff]  }
  0xe0   : > { %v1793_v20 = vcombine.low %v2940_v16, %v599_v18  ;;  %v2944_v21 = vsel %vm1106_vm5, 65537, %v2549_v15  ;;  %v2183_v40 = vld [vmem:[#allocation12] sm:$0xff]   ;;  %v2186_v43 = vld [vmem:[#allocation12 + $0x8] sm:$0xff]   ;;  %v2189_v44 = vld [vmem:[#allocation12 + $0x10] sm:$0xff]  }
  0xe1   : > { %1893 = vmatpush3.bf16.msra.mxu0 %v2169_v7  ;;  %v1837_v24 = vcombine.low %v2940_v16, %v2944_v21  ;;  %1913 = vmatpush3.bf16.msra.mxu1 %v2185_v30  ;;  %v2190_v45 = vld [vmem:[#allocation11 + $0x58] sm:$0xff]   ;;  %v2193_v48 = vld [vmem:[#allocation11 + $0x60] sm:$0xff]   ;;  %v2196_v51 = vld [vmem:[#allocation11 + $0x68] sm:$0xff]  }
  0xe2   : > { %1894 = vmatprep.subr.bf16.mxu0 %v2170_v8  ;;  %vm2948_vm6 = vcmp.ne.s16.totalorder %v1793_v20, 0  ;;  %1914 = vmatprep.subr.bf16.mxu1 %v2187_v33  ;;  %v2191_v46 = vld [vmem:[#allocation11 + $0x18] sm:$0xff]   ;;  %v2194_v49 = vld [vmem:[#allocation11 + $0x20] sm:$0xff]   ;;  %v2197_v52 = vld [vmem:[#allocation11 + $0x28] sm:$0xff]  }
  0xe3   : > { %v604_v29 = vsel %vm2948_vm6, 0, %v2938_v14  ;;  %v2192_v47 = vld [vmem:[#allocation12 + $0x18] sm:$0xff]   ;;  %v2195_v50 = vld [vmem:[#allocation12 + $0x20] sm:$0xff]   ;;  %v2198_v53 = vld [vmem:[#allocation12 + $0x28] sm:$0xff]   ;;  %vm2990_vm8 = vcmp.ne.s16.totalorder %v1837_v24, 0 }
  0xe4   : > { %v605_v31 = vunpack.c.l.bf16 %v604_v29  ;;  %v606_v32 = vunpack.c.h.bf16 %v604_v29  ;;  %v2199_v54 = vld [vmem:[#allocation11 + $0x70] sm:$0xff]   ;;  %v2202_v57 = vld [vmem:[#allocation11 + $0x78] sm:$0xff]   ;;  %v2205_v60 = vld [vmem:[#allocation14 + $0x40] sm:$0xff]  }
  0xe5   : > { %1895 = vmatpush3.bf16.msra.mxu0 %v2171_v10  ;;  %1915 = vmatpush3.bf16.msra.mxu1 %v2188_v37  ;;  %v2200_v55 = vld [vmem:[#allocation11 + $0x30] sm:$0xff]   ;;  %v2203_v58 = vld [vmem:[#allocation11 + $0x38] sm:$0xff]   ;;  %v2206_v18 = vld [vmem:[#allocation14] sm:$0xff]  }
  0xe6   : > { %1896 = vmatprep.subr.bf16.mxu0 %v2172_v11  ;;  %v607_v35 = vrot.slane %v605_v31, 7  ;;  %v608_v36 = vrot.slane %v606_v32, 7  ;;  %1916 = vmatprep.subr.bf16.mxu1 %v2190_v45  ;;  %v2201_v56 = vld [vmem:[#allocation12 + $0x30] sm:$0xff]   ;;  %v2204_v59 = vld [vmem:[#allocation12 + $0x38] sm:$0xff]   ;;  %v2207_v20 = vld [vmem:[#allocation14 + $0x48] sm:$0xff]  }
  0xe7   : > { %v1794_v62 = vld [vmem:[%s3089_s2] ss:$0 sm:$0xff]  ;;  %v2208_v22 = vld [vmem:[#allocation14 + $0x8] sm:$0xff]   ;;  %v2211_v27 = vld [vmem:[#allocation14 + $0x58] sm:$0xff]  }
  0xe8   : > { %v610_v38 = vsel %vm609_vm7, %v607_v35, %v608_v36  ;;  %v611_v39 = vsel %vm609_vm7, %v608_v36, %v607_v35  ;;  %v2212_v29 = vld [vmem:[#allocation14 + $0x18] sm:$0xff]   ;;  %v2213_v32 = vld [vmem:[#allocation14 + $0x60] sm:$0xff]   ;;  %v2216_v35 = vld [vmem:[#allocation14 + $0x28] sm:$0xff]  }
  0xe9   : > { %1897 = vmatpush3.bf16.msra.mxu0 %v2173_v12  ;;  %v612_v41 = vpack.c.bf16 %v610_v38, %v611_v39  ;;  %1917 = vmatpush3.bf16.msra.mxu1 %v2191_v46  ;;  %v2214_v33 = vld [vmem:[#allocation14 + $0x20] sm:$0xff]   ;;  %v2217_v36 = vld [vmem:[#allocation14 + $0x70] sm:$0xff]   ;;  %v2219_v38 = vld [vmem:[#allocation14 + $0x78] sm:$0xff]  }
  0xea   : > { %1898 = vmatprep.subr.bf16.mxu0 %v2174_v13  ;;  %1918 = vmatprep.subr.bf16.mxu1 %v2193_v48  ;;  %v2218_v37 = vld [vmem:[#allocation14 + $0x30] sm:$0xff]   ;;  %v2220_v39 = vld [vmem:[#allocation14 + $0x38] sm:$0xff]  }
  0xeb   : > { %v2225_v45 = vld [vmem:[#allocation15 + $0x50] sm:$0xff]  }
  0xec   : > { %v2226_v46 = vld [vmem:[#allocation15 + $0x10] sm:$0xff]  }
  0xed   : > { %1899 = vmatpush3.bf16.msra.mxu0 %v2175_v17  ;;  %1919 = vmatpush3.bf16.msra.mxu1 %v2194_v49  ;;  %v1811_v48 = vld [vmem:[%s3133_s10] ss:$0 sm:$0xff]  ;;  %s3140_s10 = sld [smem:[#allocation30_spill]] }
  0xee   : > { %1900 = vmatprep.subr.bf16.mxu0 %v2176_v23  ;;  %1920 = vmatprep.subr.bf16.mxu1 %v2196_v51  ;;  %v2209_v23 = vld [vmem:[#allocation14 + $0x50] sm:$0xff]  }
  0xef   : > { %v1855_v6 = vld [vmem:[%s3138_s18] ss:$0 sm:$0xff]  ;;  %s2443_s18 = scalar_lea.vmem %s3033_s23, 256 }
  0xf0   : > { %p2444_p2 = scmp.ne.s32.totalorder %s3033_s23, %s2443_s18 }
  0xf1   : > { %1901 = vmatpush3.bf16.msra.mxu0 %v2177_v25  ;;  %1921 = vmatpush3.bf16.msra.mxu1 %v2197_v52  ;;  %v2210_v25 = vld [vmem:[#allocation14 + $0x10] sm:$0xff]  }
  0xf2   : > { %1902 = vmatprep.subr.bf16.mxu0 %v2178_v28  ;;  %1922 = vmatprep.subr.bf16.mxu1 %v2199_v54  ;;  %p2445_p10 = pnand %p2444_p2, %p3142_p9 }
  0xf4   : > { %p2446_p12 = pneg %p2445_p10 }
  0xf5   : > { %1903 = vmatpush3.bf16.msra.mxu0 %v2179_v34  ;;  %1923 = vmatpush3.bf16.msra.mxu1 %v2200_v55  ;;  %v2215_v34 = vld [vmem:[#allocation14 + $0x68] sm:$0xff]  }
  0xf6   : > { %1994 = vmatprep.subr.bf16.mxu0 %v2550_v42  ;;  %1924 = vmatprep.subr.bf16.mxu1 %v2202_v57 }
  0xf8   : > { %781 = vmatmul.mubr.bf16.vlgmr.msra.gmra.mrb[0].mxu0 %v612_v41  ;;  %v2222_v41 = vld [vmem:[#allocation15] sm:$0xff]  }
  0xf9   : > { %1995 = vmatpush3.bf16.msra.mxu0 %v2183_v40  ;;  %2010 = vmatprep.mubr.msk.bf16.mxu0 %vm2548_vm0, %v2550_v42  ;;  %v2221_v40 = vld [vmem:[#allocation15 + $0x40] sm:$0xff]  }
  0xfa   : > { %1996 = vmatprep.subr.bf16.mxu0 %v2550_v42  ;;  %1925 = vmatpush3.bf16.msra.mxu1 %v2203_v58 }
  0xfb   : > { %1941 = vmatprep.subr.bf16.mxu1 %v2205_v60 }
  0xfd   : > { %1997 = vmatpush3.bf16.msra.mxu0 %v2186_v43  ;;  %v2223_v43 = vld [vmem:[#allocation15 + $0x48] sm:$0xff]  }
  0xfe   : > { %1998 = vmatprep.subr.bf16.mxu0 %v2550_v42 }
 0x101   : > { %1999 = vmatpush3.bf16.msra.mxu0 %v2189_v44  ;;  %v2224_v44 = vld [vmem:[#allocation15 + $0x8] sm:$0xff]  }
 0x102   : > { %2000 = vmatprep.subr.bf16.mxu0 %v2550_v42 }
 0x105   : > { %2001 = vmatpush3.bf16.msra.mxu0 %v2192_v47 }
 0x106   : > { %2002 = vmatprep.subr.bf16.mxu0 %v2550_v42 }
 0x109   : > { %2003 = vmatpush3.bf16.msra.mxu0 %v2195_v50  ;;  %v1828_v50 = vld [vmem:[%s3134_s6] ss:$0 sm:$0xff]  ;;  %s1887_s6 = sshll.u32 %s3139_s15, 8  ;;  %s2551_s15 = smov [#allocation18]  }
 0x10a   : > { %2004 = vmatprep.subr.bf16.mxu0 %v2550_v42  ;;  %s2447_s16 = sshll.u32 %s2551_s15, 4  ;;  %s2448_s16 = int_to_ptr.vmem [resolvable:$false] %s2447_s16 }
 0x10b   : > { %s2449_s13 = scalar_lea.vmem %s2448_s16, 512  ;;  %p2450_p0 = scmp.lt.s32.totalorder %s3033_s23, %s2448_s16 }
 0x10c   : > { %p2451_p7 = scmp.lt.s32.totalorder %s2449_s13, %s2443_s18 }
 0x10d   : > { %2005 = vmatpush3.bf16.msra.mxu0 %v2198_v53 }
 0x10e   : > { %2006 = vmatprep.subr.bf16.mxu0 %v2550_v42  ;;  %p2452_p5 = por %p2451_p7, %p2450_p0 }
 0x110   : > { %p2453_p8 = pnand %p2452_p5, %p2446_p12 }
 0x111   : > { %2007 = vmatpush3.bf16.msra.mxu0 %v2201_v56 }
 0x112   : > { %2008 = vmatprep.subr.bf16.mxu0 %v2550_v42 }
 0x115   : > { %2009 = vmatpush3.bf16.msra.mxu0 %v2204_v59 }
 0x116   : > { %1963 = vmatprep.subr.bf16.mxu0 %v2221_v40 }
 0x118   : > { %2011 = vmatmul.mubr.bf16.vlgmr.msra.gmra.mrb[4].mxu0 %v2938_v14 }
 0x119   : > { %1964 = vmatpush3.bf16.msra.mxu0 %v2222_v41 }
 0x11a   : > { %1965 = vmatprep.subr.bf16.mxu0 %v2223_v43 }
 0x11d   : > { %1966 = vmatpush3.bf16.msra.mxu0 %v2224_v44 }
 0x11e   : > { %1967 = vmatprep.subr.bf16.mxu0 %v2225_v45 }
 0x121   : > { %1968 = vmatpush3.bf16.msra.mxu0 %v2226_v46 }
 0x1cb   : > { %v1904_v61 = vpop.f32.mrb[0].mxu0 }
 0x1cc   : > { %v1905_v63 = vpop.f32.mrb[1].mxu0 }
 0x1cd   : > { %v1906_v0 = vadd.f32 %v1905_v63, %v1904_v61  ;;  %v1907_v1 = vpop.f32.mrb[2].mxu0 }
 0x1ce   : > { %v1908_v2 = vpop.f32.mrb[3].mxu0 }
 0x1cf   : > { %v783_v3 = vadd.f32 %v1906_v0, %v1794_v62  ;;  %v1909_v4 = vadd.f32 %v1908_v2, %v1907_v1 }
 0x1d1   : > { %v786_v5 = vadd.f32 %v1909_v4, %v1794_v62  ;;  %v789_v7 = vmax.f32 %v783_v3, 0.0 }
 0x1d3   : > { %v790_v8 = vmax.f32 %v786_v5, 0.0 }
 0x1d5   : > { %v791_v9 = vpack.c.bf16 %v790_v8, %v789_v7 }
 0x1d7   : > { %v794_v10 = vsel %vm2948_vm6, 0, %v791_v9  ;;  %969 = vmatprep.mubr.bf16.mxu1 %v791_v9  ;;  %v2227_v9 = vld [vmem:[#allocation15 + $0x58] sm:$0xff]  }
 0x1d8   : > { %v795_v11 = vunpack.c.l.bf16 %v794_v10  ;;  %v796_v12 = vunpack.c.h.bf16 %v794_v10  ;;  %v2228_v10 = vld [vmem:[#allocation15 + $0x18] sm:$0xff]   ;;  %1969 = vmatprep.subr.bf16.mxu0 %v2227_v9 }
 0x1d9   : > { %1970 = vmatpush3.bf16.msra.mxu0 %v2228_v10 }
 0x1da   : > { %v797_v13 = vrot.slane %v795_v11, 7  ;;  %v798_v14 = vrot.slane %v796_v12, 7  ;;  %v2229_v11 = vld [vmem:[#allocation15 + $0x60] sm:$0xff]  }
 0x1db   : > { %v2230_v12 = vld [vmem:[#allocation15 + $0x20] sm:$0xff]   ;;  %1971 = vmatprep.subr.bf16.mxu0 %v2229_v11 }
 0x1dc   : > { %v799_v15 = vsel %vm609_vm7, %v797_v13, %v798_v14  ;;  %v800_v17 = vsel %vm609_vm7, %v798_v14, %v797_v13  ;;  %v2231_v13 = vld [vmem:[#allocation15 + $0x68] sm:$0xff]  }
 0x1dd   : > { %v801_v19 = vpack.c.bf16 %v799_v15, %v800_v17  ;;  %1972 = vmatpush3.bf16.msra.mxu0 %v2230_v12  ;;  %v2232_v14 = vld [vmem:[#allocation15 + $0x28] sm:$0xff]   ;;  %v2233_v15 = vld [vmem:[#allocation15 + $0x70] sm:$0xff]  }
 0x1de   : > { %1973 = vmatprep.subr.bf16.mxu0 %v2231_v13  ;;  %v2234_v17 = vld [vmem:[#allocation15 + $0x30] sm:$0xff]  }
 0x1df   : > { %970 = vmatmul.mubr.bf16.vlgmr.msra.gmra.mrb[0].mxu1 %v801_v19  ;;  %v2236_v19 = vld [vmem:[#allocation15 + $0x38] sm:$0xff]  }
 0x1e0   : > { %1942 = vmatpush3.bf16.msra.mxu1 %v2206_v18  ;;  %v2235_v18 = vld [vmem:[#allocation15 + $0x78] sm:$0xff]  }
 0x1e1   : > { %1943 = vmatprep.subr.bf16.mxu1 %v2207_v20  ;;  %1974 = vmatpush3.bf16.msra.mxu0 %v2232_v14  ;;  %v2237_v20 = vld [vmem:[#allocation17] sm:$0xff]  }
 0x1e2   : > { %1975 = vmatprep.subr.bf16.mxu0 %v2233_v15 }
 0x1e4   : > { %1944 = vmatpush3.bf16.msra.mxu1 %v2208_v22  ;;  %v2238_v22 = vld [vmem:[#allocation17 + $0x8] sm:$0xff]  }
 0x1e5   : > { %1945 = vmatprep.subr.bf16.mxu1 %v2209_v23  ;;  %1976 = vmatpush3.bf16.msra.mxu0 %v2234_v17  ;;  %v2239_v23 = vld [vmem:[#allocation17 + $0x10] sm:$0xff]  }
 0x1e6   : > { %1977 = vmatprep.subr.bf16.mxu0 %v2235_v18 }
 0x1e8   : > { %1946 = vmatpush3.bf16.msra.mxu1 %v2210_v25  ;;  %v2240_v25 = vld [vmem:[#allocation17 + $0x18] sm:$0xff]  }
 0x1e9   : > { %1947 = vmatprep.subr.bf16.mxu1 %v2211_v27  ;;  %1978 = vmatpush3.bf16.msra.mxu0 %v2236_v19  ;;  %v1838_v27 = vld [vmem:[%s3137_s21] ss:$0 sm:$0xff]  ;;  %s3141_s21 = sld [smem:[#allocation31_spill]] }
 0x1eb   : > { %v1085_v26 = vpop.f32.mrb[4].mxu0 }
 0x1ec   : > { %v2012_v28 = vpop.f32.mrb[5].mxu0  ;;  %1948 = vmatpush3.bf16.msra.mxu1 %v2212_v29  ;;  %v1086_v55 = vadd.f32 %v1828_v50, %v1085_v26 }
 0x1ed   : > { %v1088_v30 = vpop.f32.mrb[6].mxu0  ;;  %1949 = vmatprep.subr.bf16.mxu1 %v2213_v32 }
 0x1ee   : > { %v2013_v31 = vpop.f32.mrb[7].mxu0  ;;  %v1089_v61 = vadd.f32 %v1828_v50, %v1088_v30  ;;  %v2244_v50 = vld [vmem:[#allocation17 + $0x38] sm:$0xff]  }
 0x1ef   : > { %s3038_s28 = scalar_lea.hbm %s3141_s21, %s1887_s6 }
 0x1f0   : > { %1950 = vmatpush3.bf16.msra.mxu1 %v2214_v33 }
 0x1f1   : > { %1951 = vmatprep.subr.bf16.mxu1 %v2215_v34 }
 0x1f4   : > { %1952 = vmatpush3.bf16.msra.mxu1 %v2216_v35 }
 0x1f5   : > { %1953 = vmatprep.subr.bf16.mxu1 %v2217_v36 }
 0x1f8   : > { %1954 = vmatpush3.bf16.msra.mxu1 %v2218_v37 }
 0x1f9   : > { %1955 = vmatprep.subr.bf16.mxu1 %v2219_v38 }
 0x1fc   : > { %1956 = vmatpush3.bf16.msra.mxu1 %v2220_v39 }
 0x1fd   : > { %2014 = vmatprep.subr.bf16.mxu1 %v2550_v42 }
 0x2b2   : > { %v1926_v47 = vpop.f32.mrb[0].mxu1 }
 0x2b3   : > { %v1927_v49 = vpop.f32.mrb[1].mxu1 }
 0x2b4   : > { %v1928_v51 = vadd.f32 %v1927_v49, %v1926_v47  ;;  %v1929_v52 = vpop.f32.mrb[2].mxu1  ;;  %v2241_v47 = vld [vmem:[#allocation17 + $0x20] sm:$0xff]   ;;  %v2243_v49 = vld [vmem:[#allocation17 + $0x30] sm:$0xff]  }
 0x2b5   : > { %v1930_v53 = vpop.f32.mrb[3].mxu1 }
 0x2b6   : > { %v972_v54 = vadd.f32 %v1928_v51, %v1811_v48  ;;  %v1931_v56 = vadd.f32 %v1930_v53, %v1929_v52 }
 0x2b8   : > { %v978_v57 = vmax.f32 %v972_v54, 0.0  ;;  %v975_v58 = vadd.f32 %v1931_v56, %v1811_v48  ;;  %v2242_v48 = vld [vmem:[#allocation17 + $0x28] sm:$0xff]  }
 0x2ba   : > { %v1092_v59 = vadd.f32 %v1086_v55, %v978_v57  ;;  %v979_v60 = vmax.f32 %v975_v58, 0.0 }
 0x2bc   : > { %v1093_v62 = vadd.f32 %v1089_v61, %v979_v60  ;;  %v1094_v63 = vmax.f32 %v1092_v59, 0.0 }
 0x2be   : > { %v1095_v0 = vmax.f32 %v1093_v62, 0.0 }
 0x2c0   : > { %v2994_v2 = vpack.c.bf16 %v1095_v0, %v1094_v63 }
 0x2c2   : > { %v1113_v3 = vsel %vm2990_vm8, 0, %v2994_v2  ;;  %1289 = vmatprep.mubr.bf16.mxu1 %v2994_v2  ;;  %v1489_v59 = vunpack.c.l.bf16 %v2994_v2  ;;  %v1490_v62 = vunpack.c.h.bf16 %v2994_v2 }
 0x2c3   : > { %v1114_v4 = vunpack.c.l.bf16 %v1113_v3  ;;  %v1115_v5 = vunpack.c.h.bf16 %v1113_v3 }
 0x2c5   : > { %v1116_v7 = vrot.slane %v1114_v4, 6  ;;  %v1117_v8 = vrot.slane %v1115_v5, 6  ;;  %v1872_v4 = vld [vmem:[%s3140_s10] ss:$0 sm:$0xff] }
 0x2c7   : > { %v1119_v16 = vsel %vm1118_vm9, %v1116_v7, %v1117_v8  ;;  %v1120_v21 = vsel %vm1118_vm9, %v1117_v8, %v1116_v7 }
 0x2c8   : > { %v1121_v24 = vpack.c.bf16 %v1119_v16, %v1120_v21 }
 0x2ca   : > { %1290 = vmatmul.mubr.bf16.vlgmr.msra.gmra.mrb[4].mxu1 %v1121_v24 }
 0x2cb   : > { %2030 = vmatprep.mubr.msk.bf16.mxu1 %vm2548_vm0, %v2550_v42  ;;  %2015 = vmatpush3.bf16.msra.mxu1 %v2237_v20 }
 0x2cc   : > { %2016 = vmatprep.subr.bf16.mxu1 %v2550_v42 }
 0x2cf   : > { %2017 = vmatpush3.bf16.msra.mxu1 %v2238_v22 }
 0x2d0   : > { %2018 = vmatprep.subr.bf16.mxu1 %v2550_v42 }
 0x2d3   : > { %2019 = vmatpush3.bf16.msra.mxu1 %v2239_v23 }
 0x2d4   : > { %2020 = vmatprep.subr.bf16.mxu1 %v2550_v42 }
 0x2d7   : > { %2021 = vmatpush3.bf16.msra.mxu1 %v2240_v25 }
 0x2d8   : > { %2022 = vmatprep.subr.bf16.mxu1 %v2550_v42 }
 0x2db   : > { %2023 = vmatpush3.bf16.msra.mxu1 %v2241_v47 }
 0x2dc   : > { %2024 = vmatprep.subr.bf16.mxu1 %v2550_v42 }
 0x2df   : > { %2025 = vmatpush3.bf16.msra.mxu1 %v2242_v48 }
 0x2e0   : > { %2026 = vmatprep.subr.bf16.mxu1 %v2550_v42 }
 0x2e3   : > { %2027 = vmatpush3.bf16.msra.mxu1 %v2243_v49 }
 0x2e4   : > { %2028 = vmatprep.subr.bf16.mxu1 %v2550_v42 }
 0x2e7   : > { %2029 = vmatpush3.bf16.msra.mxu1 %v2244_v50 }
 0x39d   : > { %v1957_v26 = vpop.f32.mrb[4].mxu1 }
 0x39e   : > { %v1958_v28 = vpop.f32.mrb[5].mxu1 }
 0x39f   : > { %v1959_v29 = vadd.f32 %v1958_v28, %v1957_v26  ;;  %v1960_v30 = vpop.f32.mrb[6].mxu1 }
 0x3a0   : > { %v1961_v31 = vpop.f32.mrb[7].mxu1 }
 0x3a1   : > { %v1292_v32 = vadd.f32 %v1959_v29, %v1838_v27  ;;  %v1962_v33 = vadd.f32 %v1961_v31, %v1960_v30 }
 0x3a3   : > { %v1295_v34 = vadd.f32 %v1962_v33, %v1838_v27  ;;  %v1298_v35 = vmax.f32 %v1292_v32, 0.0 }
 0x3a5   : > { %v1299_v36 = vmax.f32 %v1295_v34, 0.0 }
 0x3a7   : > { %v1300_v37 = vpack.c.bf16 %v1299_v36, %v1298_v35 }
 0x3a9   : > { %v1303_v38 = vsel %vm2990_vm8, 0, %v1300_v37  ;;  %1478 = vmatprep.mubr.bf16.mxu0 %v1300_v37 }
 0x3aa   : > { %v1304_v39 = vunpack.c.l.bf16 %v1303_v38  ;;  %v1305_v40 = vunpack.c.h.bf16 %v1303_v38 }
 0x3ac   : > { %v1306_v41 = vrot.slane %v1304_v39, 6  ;;  %v1307_v43 = vrot.slane %v1305_v40, 6 }
 0x3ae   : > { %v1308_v44 = vsel %vm1118_vm9, %v1306_v41, %v1307_v43  ;;  %v1309_v45 = vsel %vm1118_vm9, %v1307_v43, %v1306_v41 }
 0x3af   : > { %v1310_v46 = vpack.c.bf16 %v1308_v44, %v1309_v45 }
 0x3b1   : > { %1479 = vmatmul.mubr.bf16.vlgmr.msra.gmra.mrb[8].mxu0 %v1310_v46 }
 0x484   : > { %v1979_v51 = vpop.f32.mrb[8].mxu0 }
 0x485   : > { %v1980_v52 = vpop.f32.mrb[9].mxu0 }
 0x486   : > { %v1981_v53 = vadd.f32 %v1980_v52, %v1979_v51  ;;  %v1982_v54 = vpop.f32.mrb[10].mxu0 }
 0x487   : > { %v1983_v55 = vpop.f32.mrb[11].mxu0 }
 0x488   : > { %v1481_v56 = vadd.f32 %v1981_v53, %v1855_v6  ;;  %v1984_v57 = vadd.f32 %v1983_v55, %v1982_v54 }
 0x48a   : > { %v1487_v58 = vmax.f32 %v1481_v56, 0.0  ;;  %v1484_v60 = vadd.f32 %v1984_v57, %v1855_v6 }
 0x48c   : > { %v1491_v42 = vadd.f32 %v1489_v59, %v1487_v58  ;;  %v1488_v61 = vmax.f32 %v1484_v60, 0.0 }
 0x48e   : > { %v1492_v63 = vadd.f32 %v1490_v62, %v1488_v61  ;;  %v1493_v0 = vmax.f32 %v1491_v42, 0.0 }
 0x490   : > { %v1494_v1 = vmax.f32 %v1492_v63, 0.0 }
 0x492   : > { %v1495_v3 = vpack.c.bf16 %v1494_v1, %v1493_v0 }
 0x494   : > { %2031 = vmatmul.mubr.bf16.vlgmr.msra.gmra.mrb[8].mxu1 %v1495_v3 }
 0x567   : > { %v1601_v5 = vpop.f32.mrb[8].mxu1 }
 0x568   : > { %v1602_v7 = vadd.f32 %v1872_v4, %v1601_v5  ;;  %v2032_v2 = vpop.f32.mrb[9].mxu1 }
 0x569   : > { %v1604_v8 = vpop.f32.mrb[10].mxu1 }
 0x56a   : > { %1608 = vst [vmem:[%s563_s4] sm:$0xff] %v1602_v7  ;;  %v1605_v16 = vadd.f32 %v1872_v4, %v1604_v8  ;;  %v2033_v21 = vpop.f32.mrb[11].mxu1 }
 0x56c   : > { %1609 = vst [vmem:[%s563_s4 + $0x8] sm:$0xff] %v1605_v16 }
 0x56d   : > { %2456 = shalt.err (!%p2453_p8)
}
 0x56e   : > { %s2457_s14 = scalar_lea.hbm %s3038_s28, 256  ;;  %s2461_s6 = scalar_lea.hbm %s3141_s21, 512 }
 0x56f   : > { %p2458_p3 = scmp.ne.s32.totalorder %s3038_s28, %s2457_s14  ;;  %p2462_p13 = scmp.lt.u32.totalorder %s3038_s28, %s3141_s21 }
 0x570   : > { %p2463_p1 = scmp.lt.u32.totalorder %s2461_s6, %s2457_s14  ;;  %p2465_p2 = scmp.lt.u32.totalorder %s2457_s14, %s3038_s28 }
 0x571   : > { %p2459_p11 = pnand %p2458_p3, %p3142_p9 }
 0x572   : > { %p2464_p4 = por %p2463_p1, %p2462_p13 }
 0x573   : > { %p2460_p6 = pneg %p2459_p11 }
 0x574   : > { %p2466_p10 = por %p2465_p2, %p2464_p4 }
 0x576   : > { %p2467_p12 = pnand %p2466_p10, %p2460_p6 }
 0x578   : > { %2470 = shalt.err (!%p2467_p12)
}
 0x579   : > { %s2552_s18 = smov 128   ;;  %s2553_s15 = smov 8  }
 0x57a   : > { %2060 = dma.vmem_to_hbm [thread:$0]  (%p3142_p9), %s3033_s23, 256, %s3038_s28, %s1611_s12, %s2552_s18, %s2552_s18, %s2553_s15  }
 0x57b PF: > { %s1641_s16 = sand.u32 1, %s2517_s25   ;;  %p3143_p0 = scmp.ne.s32.totalorder %s3126_s22, 0 }
 0x57c   : > { %p3144_p7 = scmp.ge.s32.totalorder %s2537_s30, 2  ;;  %s1642_s13 = scalar_lea.sflag [#allocation8], %s1641_s16 }
 0x57e   : > { %p2086_p5 = pnand %p3144_p7, %p3143_p0 }
 0x580   : > { %2512 = dma.done.wait (!%p2086_p5), %s1642_s13, 256  }
 0x581   : > { %2514 = vsyncadd (!%p2086_p5), %s1642_s13, 4294967040  ;;  %s32_s30 = sadd.s32 1, %s2537_s30   ;;  %s3145_s25 = smov %s2521_s26 }
 0x582   : > { %p29_p8 = scmp.ge.s32.totalorder %s32_s30, 4   ;;  %s3146_s26 = smov %s2525_s27 }
 0x583   : > { %s3147_s27 = smov %s2854_s20  ;;  %s3148_s28 = smov %s2533_s29 }
 0x584   : > { %s3149_s29 = smov %s3151_s19  ;;  %31 = sbr.rel (!%p29_p8) target bundleno = 17 (0x11), region = 145 }
 0x58b   :  { %1647 = vsyncpa [#allocation7], 1 }
 0x58c   :  { %1649 = vsyncpa [#allocation7 + $0x1], 1 }
 0x58d   :  { %1650 = vsyncpa [#allocation10], 1 }
 0x58e   :  { %1651 = vsyncpa [#allocation13], 1 }
 0x58f   :  { %1652 = vsyncpa [#allocation16], 1 }
 0x590   :  { %1653 = vsyncpa [#allocation8], 1 }
 0x591   :  { %1655 = vsyncpa [#allocation8 + $0x1], 1 }

</bundles_post_ra>
